<compile_context>
chip_gen: v5e
topology: v5e:2x2
jax: 0.10.0
libtpu: 0.0.40
codegen_flags: <defaults>
</compile_context>

<pallas_src>
import functools

import jax
import jax.numpy as jnp
from jax.experimental import pallas as pl
from jax.experimental.pallas import tpu as pltpu


def _uncertainty_kernel(feat_ref, x_ref, w1_ref, w2_ref, wfc_ref, bias_ref,
                        logsigma_ref, attn_ref):
    tb, seq, _ = attn_ref.shape            # (tb, L, 1)
    d_in = x_ref.shape[1]

    x2 = x_ref[...]                        # (tb*L, d_in) bf16

    # ---- attention scores: w_2(tanh(w_1(x))), n_head == 1 -------------------
    # One well-shaped bf16 MXU matmul over all tb*L rows, f32 accumulation.
    h = jnp.tanh(jnp.dot(x2, w1_ref[...],
                         preferred_element_type=jnp.float32))    # (tb*L, d_h)

    # Single output head -> VPU multiply + lane-axis reduce (no N=1 matmul).
    logits = jnp.sum(h * w2_ref[...], axis=-1, keepdims=True)    # (tb*L, 1)
    logits = logits.reshape(tb, seq, 1)                          # (tb, L, 1)

    # ---- softmax over L (single evaluation, sublane layout used by pooling) --
    m = jnp.max(logits, axis=1, keepdims=True)
    e = jnp.exp(logits - m)
    s = jnp.sum(e, axis=1, keepdims=True)
    attn = e * pl.reciprocal(s, approx=True)                     # (tb, L, 1) f32
    attn_ref[...] = attn.astype(attn_ref.dtype)

    # ---- attention pooling: bmm(attn^T, x).squeeze(1) ------------------------
    # n_head == 1 -> weighted sum over L on the VPU, accumulated in f32.
    x3 = x2.reshape(tb, seq, d_in)
    residual = jnp.sum(attn * x3.astype(jnp.float32), axis=1)    # (tb, d_in)

    # ---- logsigma = fc(residual) + fc2(out): one fused MXU matmul ------------
    cat = jnp.concatenate([residual.astype(jnp.bfloat16), feat_ref[...]],
                          axis=-1)                               # (tb, 2*d_in)
    logsigma = (jnp.dot(cat, wfc_ref[...],
                        preferred_element_type=jnp.float32)
                + bias_ref[...])                                 # (tb, d_out)
    logsigma_ref[...] = logsigma.astype(logsigma_ref.dtype)


def uncertainty_module_image_forward(out_feat, x, params, *, block_b=256):
    """out_feat: (B, d_in), x: (B, L, d_in) -> {'logsigma', 'attention'}."""
    B, L, d_in = x.shape
    w1t, w2t, fc_wt, fc_b, fc2_wt, fc2_b = params
    d_h = w1t.shape[1]
    d_out = fc_wt.shape[1]
    assert out_feat.shape == (B, d_in)
    assert w2t.shape == (d_h, 1), "module uses a single attention head"

    tb = min(block_b, B)
    assert B % tb == 0, "batch must be divisible by the batch tile"

    # One-time input / parameter massaging (outside the kernel):
    #  * x flattened to (B*L, d_in) and shipped as bf16 (contiguous 2-D DMA
    #    slab, half the HBM bytes), out_feat shipped as bf16,
    #  * fc / fc2 fused into one (2*d_in, d_out) bf16 weight + pre-summed bias.
    x_flat = x.reshape(B * L, d_in).astype(jnp.bfloat16)
    feat_bf = out_feat.astype(jnp.bfloat16)
    w1_bf = w1t.astype(jnp.bfloat16)                       # (d_in, d_h)
    w2_row = w2t.reshape(1, d_h).astype(jnp.float32)       # (1, d_h)
    wfc_cat = jnp.concatenate([fc_wt, fc2_wt], axis=0).astype(jnp.bfloat16)
    bias = (fc_b + fc2_b).reshape(1, d_out).astype(jnp.float32)

    logsigma, attn = pl.pallas_call(
        _uncertainty_kernel,
        out_shape=(
            jax.ShapeDtypeStruct((B, d_out), jnp.float32),
            jax.ShapeDtypeStruct((B, L, 1), jnp.float32),  # torch attn layout
        ),
        grid_spec=pltpu.PrefetchScalarGridSpec(
            num_scalar_prefetch=0,
            grid=(B // tb,),
            in_specs=[
                pl.BlockSpec((tb, d_in), lambda b: (b, 0)),         # out (fc2 in)
                pl.BlockSpec((tb * L, d_in), lambda b: (b, 0)),     # x (flat bf16)
                pl.BlockSpec((d_in, d_h), lambda b: (0, 0)),        # w1^T  bf16
                pl.BlockSpec((1, d_h), lambda b: (0, 0)),           # w2 row f32
                pl.BlockSpec((2 * d_in, d_out), lambda b: (0, 0)),  # [fc;fc2]^T bf16
                pl.BlockSpec((1, d_out), lambda b: (0, 0)),         # fc.b + fc2.b
            ],
            out_specs=[
                pl.BlockSpec((tb, d_out), lambda b: (b, 0)),        # logsigma
                pl.BlockSpec((tb, L, 1), lambda b: (b, 0, 0)),      # attention
            ],
        ),
        compiler_params=pltpu.CompilerParams(
            dimension_semantics=("parallel",),
            vmem_limit_bytes=32 * 1024 * 1024,
        ),
    )(feat_bf, x_flat, w1_bf, w2_row, wfc_cat, bias)

    return {"logsigma": logsigma, "attention": attn}


# ----------------------------- parameters / reference -----------------------

def _xavier_uniform_t(key, fan_out, fan_in):
    bound = (6.0 / (fan_in + fan_out)) ** 0.5
    w = jax.random.uniform(key, (fan_out, fan_in), jnp.float32, -bound, bound)
    return w.T                                            # (fan_in, fan_out)


def make_params(key, d_in, d_out, d_h):
    k1, k2, k3, k4, k5 = jax.random.split(key, 5)
    w1t = _xavier_uniform_t(k1, d_h, d_in)                # attention.w_1
    w2t = _xavier_uniform_t(k2, 1, d_h)                   # attention.w_2 (1 head)
    fc_wt = _xavier_uniform_t(k3, d_out, d_in)            # fc (xavier)
    fc_b = jnp.zeros((d_out,), jnp.float32)               # fc bias = 0
    kb = 1.0 / (d_in ** 0.5)                              # torch default Linear init
    fc2_wt = jax.random.uniform(k4, (d_out, d_in), jnp.float32, -kb, kb).T
    fc2_b = jax.random.uniform(k5, (d_out,), jnp.float32, -kb, kb)
    return (w1t, w2t, fc_wt, fc_b, fc2_wt, fc2_b)


def _reference(out_feat, x, params):
    w1t, w2t, fc_wt, fc_b, fc2_wt, fc2_b = params
    scores = jnp.tanh(x @ w1t) @ w2t                       # (B, L, 1)
    attn = jax.nn.softmax(scores, axis=1)                  # softmax over L
    residual = jnp.einsum('blh,bld->bhd', attn, x)[:, 0, :]
    logsigma = residual @ fc_wt + fc_b + out_feat @ fc2_wt + fc2_b
    return {"logsigma": logsigma, "attention": attn}


if __name__ == "__main__":
    B, L = 32, 16                      # tb*L = 512 (multiple of 256 MXU rows)
    d_in, d_h, d_out = 32, 32, 32

    key = jax.random.PRNGKey(0)
    k_out, k_x, k_p = jax.random.split(key, 3)
    out_feat = jax.random.normal(k_out, (B, d_in), jnp.float32)
    x = jax.random.normal(k_x, (B, L, d_in), jnp.float32)
    params = make_params(k_p, d_in, d_out, d_h)

    fwd = jax.jit(functools.partial(uncertainty_module_image_forward,
                                    block_b=256))
    got = fwd(out_feat, x, params)
    jax.block_until_ready(got)

    want = _reference(out_feat, x, params)
    assert got["attention"].shape == (B, L, 1)
    assert jnp.allclose(got["logsigma"], want["logsigma"],
                        atol=5e-2, rtol=5e-2), "logsigma mismatch"
    assert jnp.allclose(got["attention"], want["attention"],
                        atol=2e-2, rtol=2e-2), "attention mismatch"

    print("KERNEL_OK")
</pallas_src>

<mosaic_0001>
module attributes {stable_mosaic.version = 11 : i64} {
  func.func @_uncertainty_kernel(%arg0: i32, %arg1: memref<32x32xbf16, #tpu.memory_space<vmem>>, %arg2: memref<512x32xbf16, #tpu.memory_space<vmem>>, %arg3: memref<32x32xbf16, #tpu.memory_space<vmem>>, %arg4: memref<1x32xf32, #tpu.memory_space<vmem>>, %arg5: memref<64x32xbf16, #tpu.memory_space<vmem>>, %arg6: memref<1x32xf32, #tpu.memory_space<vmem>>, %arg7: memref<32x32xf32, #tpu.memory_space<vmem>>, %arg8: memref<32x16x1xf32, #tpu.memory_space<vmem>>) attributes {dimension_semantics = [#tpu.dimension_semantics<parallel>], iteration_bounds = array<i64: 1>, scalar_prefetch = 0 : i64, scratch_operands = 0 : i64, tpu.core_type = #tpu.core_type<tc>, window_params = [{transform_indices = @transform_0, window_bounds = array<i64: 32, 32>}, {transform_indices = @transform_1, window_bounds = array<i64: 512, 32>}, {pipeline_mode = #tpu.pipeline_mode<synchronous>, transform_indices = @transform_2, window_bounds = array<i64: 32, 32>}, {pipeline_mode = #tpu.pipeline_mode<synchronous>, transform_indices = @transform_3, window_bounds = array<i64: 1, 32>}, {pipeline_mode = #tpu.pipeline_mode<synchronous>, transform_indices = @transform_4, window_bounds = array<i64: 64, 32>}, {pipeline_mode = #tpu.pipeline_mode<synchronous>, transform_indices = @transform_5, window_bounds = array<i64: 1, 32>}, {transform_indices = @transform_6, window_bounds = array<i64: 32, 32>}, {transform_indices = @transform_7, window_bounds = array<i64: 32, 16, 1>}]} {
    %c0 = arith.constant 0 : index
    %c0_0 = arith.constant 0 : index
    %0 = vector.load %arg2[%c0, %c0_0] : memref<512x32xbf16, #tpu.memory_space<vmem>>, vector<512x32xbf16>
    %c0_1 = arith.constant 0 : index
    %c0_2 = arith.constant 0 : index
    %1 = vector.load %arg3[%c0_1, %c0_2] : memref<32x32xbf16, #tpu.memory_space<vmem>>, vector<32x32xbf16>
    %cst = arith.constant dense<0.000000e+00> : vector<512x32xf32>
    %2 = tpu.matmul %0, %1, %cst {dimension_numbers = #tpu.dot_dimension_numbers<[1], [0], [0], [1], [0, 0, 1, 1], [], []>} : vector<512x32xbf16>, vector<32x32xbf16>, vector<512x32xf32> -> vector<512x32xf32>
    %3 = math.tanh %2 : vector<512x32xf32>
    %c0_3 = arith.constant 0 : index
    %c0_4 = arith.constant 0 : index
    %4 = vector.load %arg4[%c0_3, %c0_4] : memref<1x32xf32, #tpu.memory_space<vmem>>, vector<1x32xf32>
    %5 = vector.broadcast %4 : vector<1x32xf32> to vector<512x32xf32>
    %6 = arith.mulf %3, %5 : vector<512x32xf32>
    %cst_5 = arith.constant dense<0.000000e+00> : vector<512xf32>
    %7 = vector.multi_reduction <add>, %6, %cst_5 [1] : vector<512x32xf32> to vector<512xf32>
    %8 = vector.shape_cast %7 : vector<512xf32> to vector<512x1xf32>
    %9 = vector.shape_cast %8 : vector<512x1xf32> to vector<32x16x1xf32>
    %cst_6 = arith.constant dense<0xFF800000> : vector<32x1xf32>
    %10 = vector.multi_reduction <maximumf>, %9, %cst_6 [1] : vector<32x16x1xf32> to vector<32x1xf32>
    %11 = vector.shape_cast %10 : vector<32x1xf32> to vector<32x1x1xf32>
    %12 = vector.broadcast %11 : vector<32x1x1xf32> to vector<32x16x1xf32>
    %13 = arith.subf %9, %12 : vector<32x16x1xf32>
    %14 = math.exp %13 : vector<32x16x1xf32>
    %cst_7 = arith.constant dense<0.000000e+00> : vector<32x1xf32>
    %15 = vector.multi_reduction <add>, %14, %cst_7 [1] : vector<32x16x1xf32> to vector<32x1xf32>
    %16 = vector.shape_cast %15 : vector<32x1xf32> to vector<32x1x1xf32>
    %17 = tpu.reciprocal %16 {approx = true} : vector<32x1x1xf32> -> vector<32x1x1xf32>
    %18 = vector.broadcast %17 : vector<32x1x1xf32> to vector<32x16x1xf32>
    %19 = arith.mulf %14, %18 : vector<32x16x1xf32>
    %c0_8 = arith.constant 0 : index
    %c0_9 = arith.constant 0 : index
    %c0_10 = arith.constant 0 : index
    %20 = vector.load %arg8[%c0_8, %c0_9, %c0_10] : memref<32x16x1xf32, #tpu.memory_space<vmem>>, vector<32x16x1xf32>
    tpu.vector_store %arg8[%c0_8, %c0_9, %c0_10], %19 {strides = array<i32>} : memref<32x16x1xf32, #tpu.memory_space<vmem>>, vector<32x16x1xf32>,
    %21 = vector.shape_cast %0 : vector<512x32xbf16> to vector<32x16x32xbf16>
    %22 = arith.extf %21 : vector<32x16x32xbf16> to vector<32x16x32xf32>
    %23 = vector.broadcast %19 : vector<32x16x1xf32> to vector<32x16x32xf32>
    %24 = arith.mulf %23, %22 : vector<32x16x32xf32>
    %cst_11 = arith.constant dense<0.000000e+00> : vector<32x32xf32>
    %25 = vector.multi_reduction <add>, %24, %cst_11 [1] : vector<32x16x32xf32> to vector<32x32xf32>
    %26 = arith.truncf %25 : vector<32x32xf32> to vector<32x32xbf16>
    %c0_12 = arith.constant 0 : index
    %c0_13 = arith.constant 0 : index
    %27 = vector.load %arg1[%c0_12, %c0_13] : memref<32x32xbf16, #tpu.memory_space<vmem>>, vector<32x32xbf16>
    %28 = tpu.concatenate %26, %27 in 1 : vector<32x32xbf16>, vector<32x32xbf16> -> vector<32x64xbf16>
    %c0_14 = arith.constant 0 : index
    %c0_15 = arith.constant 0 : index
    %29 = vector.load %arg5[%c0_14, %c0_15] : memref<64x32xbf16, #tpu.memory_space<vmem>>, vector<64x32xbf16>
    %cst_16 = arith.constant dense<0.000000e+00> : vector<32x32xf32>
    %30 = tpu.matmul %28, %29, %cst_16 {dimension_numbers = #tpu.dot_dimension_numbers<[1], [0], [0], [1], [0, 0, 1, 1], [], []>} : vector<32x64xbf16>, vector<64x32xbf16>, vector<32x32xf32> -> vector<32x32xf32>
    %c0_17 = arith.constant 0 : index
    %c0_18 = arith.constant 0 : index
    %31 = vector.load %arg6[%c0_17, %c0_18] : memref<1x32xf32, #tpu.memory_space<vmem>>, vector<1x32xf32>
    %32 = vector.broadcast %31 : vector<1x32xf32> to vector<32x32xf32>
    %33 = arith.addf %30, %32 : vector<32x32xf32>
    %c0_19 = arith.constant 0 : index
    %c0_20 = arith.constant 0 : index
    %34 = vector.load %arg7[%c0_19, %c0_20] : memref<32x32xf32, #tpu.memory_space<vmem>>, vector<32x32xf32>
    tpu.vector_store %arg7[%c0_19, %c0_20], %33 {strides = array<i32>} : memref<32x32xf32, #tpu.memory_space<vmem>>, vector<32x32xf32>,
    return
  }
  func.func @transform_0(%arg0: i32) -> (i32, i32) {
    %c0_i32 = arith.constant 0 : i32
    %c0_i32_0 = arith.constant 0 : i32
    return %arg0, %c0_i32 : i32, i32
  }
  func.func @transform_1(%arg0: i32) -> (i32, i32) {
    %c0_i32 = arith.constant 0 : i32
    %c0_i32_0 = arith.constant 0 : i32
    return %arg0, %c0_i32 : i32, i32
  }
  func.func @transform_2(%arg0: i32) -> (i32, i32) {
    %c0_i32 = arith.constant 0 : i32
    %c0_i32_0 = arith.constant 0 : i32
    %c0_i32_1 = arith.constant 0 : i32
    return %c0_i32, %c0_i32_0 : i32, i32
  }
  func.func @transform_3(%arg0: i32) -> (i32, i32) {
    %c0_i32 = arith.constant 0 : i32
    %c0_i32_0 = arith.constant 0 : i32
    %c0_i32_1 = arith.constant 0 : i32
    return %c0_i32, %c0_i32_0 : i32, i32
  }
  func.func @transform_4(%arg0: i32) -> (i32, i32) {
    %c0_i32 = arith.constant 0 : i32
    %c0_i32_0 = arith.constant 0 : i32
    %c0_i32_1 = arith.constant 0 : i32
    return %c0_i32, %c0_i32_0 : i32, i32
  }
  func.func @transform_5(%arg0: i32) -> (i32, i32) {
    %c0_i32 = arith.constant 0 : i32
    %c0_i32_0 = arith.constant 0 : i32
    %c0_i32_1 = arith.constant 0 : i32
    return %c0_i32, %c0_i32_0 : i32, i32
  }
  func.func @transform_6(%arg0: i32) -> (i32, i32) {
    %c0_i32 = arith.constant 0 : i32
    %c0_i32_0 = arith.constant 0 : i32
    return %arg0, %c0_i32 : i32, i32
  }
  func.func @transform_7(%arg0: i32) -> (i32, i32, i32) {
    %c0_i32 = arith.constant 0 : i32
    %c0_i32_0 = arith.constant 0 : i32
    %c0_i32_1 = arith.constant 0 : i32
    return %arg0, %c0_i32, %c0_i32_0 : i32, i32, i32
  }
}

</mosaic_0001>

<bundles_post_ra>
// kernel: uncertainty_module_image_forward.1
= control target key start
LH: loop header
LB: loop body
LE: loop exit
PB: predicated region body
PF: predicated region fallthrough
CT: control target
= control target key end

     0   :  { %s4700_s0 = inlined_call_operand.vmem [shape: bf16[32,32], index: 0, kind: input, shape index: {}]   ;;  %s4701_s1 = inlined_call_operand.vmem [shape: bf16[512,32], index: 1, kind: input, shape index: {}]   ;;  %s4702_s2 = inlined_call_operand.vmem [shape: bf16[32,32], index: 2, kind: input, shape index: {}]   ;;  %s4703_s3 = inlined_call_operand.vmem [shape: f32[1,32], index: 3, kind: input, shape index: {}]   ;;  %s4704_s4 = inlined_call_operand.vmem [shape: bf16[64,32], index: 4, kind: input, shape index: {}]   ;;  %s4705_s5 = inlined_call_operand.vmem [shape: f32[1,32], index: 5, kind: input, shape index: {}]   ;;  %s4706_s6 = inlined_call_operand.hbm [shape: f32[32,32], index: 6, kind: output, shape index: {0}]   ;;  %s4707_s7 = inlined_call_operand.vmem [shape: f32[32,16,1], index: 7, kind: output, shape index: {1}]  }
   0x1   :  { %v2576_v0 = vld [vmem:[%s4702_s2 + $0x8] sm:$0xff]  ;;  %v2575_v1 = vld [vmem:[%s4702_s2] sm:$0xff] }
   0x2   :  { %370 = vmatpush.bf16.msra.mxu0 %v2576_v0  ;;  %2583 = vmatpush.bf16.msra.mxu1 %v2576_v0 }
   0x3   :  { %2584 = vmatpush.bf16.msra.mxu2 %v2576_v0  ;;  %2585 = vmatpush.bf16.msra.mxu3 %v2576_v0 }
   0x4   :  { %13 = vsyncpa [#allocation3], 0  ;;  %v2543_v2 = vld [vmem:[%s4701_s1] sm:$0xff]  ;;  %v2552_v3 = vld [vmem:[%s4701_s1 + $0x48] sm:$0xff]  ;;  %vm267_vm0 = vcmask 261120   ;;  %vm1593_vm1 = vcmask 7168  }
   0x5   :  { %v2557_v4 = vld [vmem:[%s4701_s1 + $0x70] sm:$0xff]  ;;  %v2566_v5 = vld [vmem:[%s4701_s1 + $0xb8] sm:$0xff]  ;;  %v2544_v6 = vld [vmem:[%s4701_s1 + $0x8] sm:$0xff]  ;;  %s2941_s30 = smov 32   ;;  %vm2206_vm2 = vcmask 1041409   ;;  %vm2208_vm3 = vcmask 1042434  }
   0x6   :  { %371 = vmatpush.bf16.msra.mxu0 %v2575_v1  ;;  %2586 = vmatpush.bf16.msra.mxu1 %v2575_v1  ;;  %v2553_v7 = vld [vmem:[%s4701_s1 + $0x50] sm:$0xff]  ;;  %v2558_v8 = vld [vmem:[%s4701_s1 + $0x78] sm:$0xff]  ;;  %v2567_v9 = vld [vmem:[%s4701_s1 + $0xc0] sm:$0xff]  ;;  %vm2210_vm4 = vcmask 1043459   ;;  %vm2212_vm5 = vcmask 1044484   ;;  %vm2214_vm6 = vcmask 1045509  }
   0x7   :  { %2587 = vmatpush.bf16.msra.mxu2 %v2575_v1  ;;  %2588 = vmatpush.bf16.msra.mxu3 %v2575_v1  ;;  %v2545_v10 = vld [vmem:[%s4701_s1 + $0x10] sm:$0xff]  ;;  %v2554_v11 = vld [vmem:[%s4701_s1 + $0x58] sm:$0xff]  ;;  %v2559_v12 = vld [vmem:[%s4701_s1 + $0x80] sm:$0xff]  ;;  %vm2216_vm7 = vcmask 1046534   ;;  %vm2218_vm8 = vcmask 1047559   ;;  %vm2299_vm9 = vcmask 523264  }
   0x8   :  { %v2568_v13 = vld [vmem:[%s4701_s1 + $0xc8] sm:$0xff]  ;;  %v2546_v14 = vld [vmem:[%s4701_s1 + $0x18] sm:$0xff]  ;;  %v2555_v15 = vld [vmem:[%s4701_s1 + $0x60] sm:$0xff]  ;;  %s2942_s24 = smov [#allocation2]   ;;  %s2333_s27 = sshll.u32 %s4706_s6, 4  ;;  %s2334_s27 = int_to_ptr.hbm [resolvable:$true] %s2333_s27 }
   0x9   :  { %2485 = vmatmul.msk.bf16.vlgmr.msra.gmra.mxu0 %vm267_vm0, %v2543_v2  ;;  %2494 = vmatmul.msk.bf16.vlgmr.msra.gmra.mxu1 %vm267_vm0, %v2552_v3  ;;  %v2560_v16 = vld [vmem:[%s4701_s1 + $0x88] sm:$0xff]  ;;  %v2569_v17 = vld [vmem:[%s4701_s1 + $0xd0] sm:$0xff]  ;;  %v2547_v18 = vld [vmem:[%s4701_s1 + $0x20] sm:$0xff]  ;;  %s2944_s28 = smov 8  }
   0xa   :  { %2499 = vmatmul.msk.bf16.vlgmr.msra.gmra.mxu2 %vm267_vm0, %v2557_v4  ;;  %2508 = vmatmul.msk.bf16.vlgmr.msra.gmra.mxu3 %vm267_vm0, %v2566_v5  ;;  %v2556_v19 = vld [vmem:[%s4701_s1 + $0x68] sm:$0xff]  ;;  %v2561_v20 = vld [vmem:[%s4701_s1 + $0x90] sm:$0xff]  ;;  %v2570_v21 = vld [vmem:[%s4701_s1 + $0xd8] sm:$0xff] }
   0xb   :  { %v2548_v22 = vld [vmem:[%s4701_s1 + $0x28] sm:$0xff]  ;;  %v2562_v23 = vld [vmem:[%s4701_s1 + $0x98] sm:$0xff]  ;;  %v2571_v24 = vld [vmem:[%s4701_s1 + $0xe0] sm:$0xff] }
   0xc   :  { %v2549_v25 = vld [vmem:[%s4701_s1 + $0x30] sm:$0xff]  ;;  %v2563_v26 = vld [vmem:[%s4701_s1 + $0xa0] sm:$0xff]  ;;  %v2572_v27 = vld [vmem:[%s4701_s1 + $0xe8] sm:$0xff] }
   0xd   :  { %v2550_v28 = vld [vmem:[%s4701_s1 + $0x38] sm:$0xff]  ;;  %v2564_v29 = vld [vmem:[%s4701_s1 + $0xa8] sm:$0xff]  ;;  %v2573_v30 = vld [vmem:[%s4701_s1 + $0xf0] sm:$0xff] }
   0xe   :  { %v2551_v31 = vld [vmem:[%s4701_s1 + $0x40] sm:$0xff]  ;;  %v2565_v34 = vld [vmem:[%s4701_s1 + $0xb0] sm:$0xff]  ;;  %v2574_v35 = vld [vmem:[%s4701_s1 + $0xf8] sm:$0xff] }
   0xf   :  { %v3120_v36 = vld [vmem:[%s4703_s3] ss:$0 sm:$0xff] }
  0x19   :  { %2486 = vmatmul.msk.bf16.gmra.mxu0 %vm267_vm0, %v2544_v6  ;;  %2495 = vmatmul.msk.bf16.gmra.mxu1 %vm267_vm0, %v2553_v7 }
  0x1a   :  { %2500 = vmatmul.msk.bf16.gmra.mxu2 %vm267_vm0, %v2558_v8  ;;  %2509 = vmatmul.msk.bf16.gmra.mxu3 %vm267_vm0, %v2567_v9 }
  0x29   :  { %2487 = vmatmul.msk.bf16.gmra.mxu0 %vm267_vm0, %v2545_v10  ;;  %2496 = vmatmul.msk.bf16.gmra.mxu1 %vm267_vm0, %v2554_v11 }
  0x2a   :  { %2501 = vmatmul.msk.bf16.gmra.mxu2 %vm267_vm0, %v2559_v12  ;;  %2510 = vmatmul.msk.bf16.gmra.mxu3 %vm267_vm0, %v2568_v13 }
  0x39   :  { %2488 = vmatmul.msk.bf16.gmra.mxu0 %vm267_vm0, %v2546_v14  ;;  %2497 = vmatmul.msk.bf16.gmra.mxu1 %vm267_vm0, %v2555_v15 }
  0x3a   :  { %2502 = vmatmul.msk.bf16.gmra.mxu2 %vm267_vm0, %v2560_v16  ;;  %2511 = vmatmul.msk.bf16.gmra.mxu3 %vm267_vm0, %v2569_v17 }
  0x49   :  { %2489 = vmatmul.msk.bf16.gmra.mxu0 %vm267_vm0, %v2547_v18  ;;  %2498 = vmatmul.msk.bf16.gmra.mxu1 %vm267_vm0, %v2556_v19 }
  0x4a   :  { %2503 = vmatmul.msk.bf16.gmra.mxu2 %vm267_vm0, %v2561_v20  ;;  %2512 = vmatmul.msk.bf16.gmra.mxu3 %vm267_vm0, %v2570_v21 }
  0x59   :  { %2490 = vmatmul.msk.bf16.gmra.mxu0 %vm267_vm0, %v2548_v22 }
  0x5a   :  { %2504 = vmatmul.msk.bf16.gmra.mxu2 %vm267_vm0, %v2562_v23  ;;  %2513 = vmatmul.msk.bf16.gmra.mxu3 %vm267_vm0, %v2571_v24 }
  0x69   :  { %2491 = vmatmul.msk.bf16.gmra.mxu0 %vm267_vm0, %v2549_v25 }
  0x6a   :  { %2505 = vmatmul.msk.bf16.gmra.mxu2 %vm267_vm0, %v2563_v26  ;;  %2514 = vmatmul.msk.bf16.gmra.mxu3 %vm267_vm0, %v2572_v27 }
  0x79   :  { %2492 = vmatmul.msk.bf16.gmra.mxu0 %vm267_vm0, %v2550_v28 }
  0x7a   :  { %2506 = vmatmul.msk.bf16.gmra.mxu2 %vm267_vm0, %v2564_v29  ;;  %2515 = vmatmul.msk.bf16.gmra.mxu3 %vm267_vm0, %v2573_v30 }
  0x86   :  { %v373_v32 = vpop.f32.mrf.mxu0  ;;  %v418_v33 = vpop.f32.mrf.mxu1 }
  0x87   :  { %2595 = vtanh.f32 %v373_v32 }
  0x88   :  { %2597 = vtanh.f32 %v418_v33 }
  0x89   :  { %2493 = vmatmul.msk.bf16.gmra.mxu0 %vm267_vm0, %v2551_v31 }
  0x8a   :  { %2507 = vmatmul.msk.bf16.gmra.mxu2 %vm267_vm0, %v2565_v34  ;;  %2516 = vmatmul.msk.bf16.gmra.mxu3 %vm267_vm0, %v2574_v35 }
  0x8d   :  { %v2596_v37 = vpop.eup %2595  ;;  %v443_v38 = vpop.f32.mrf.mxu2 }
  0x8e   :  { %v3124_v39 = vpop.f32.mrf.mxu3  ;;  %2599 = vtanh.f32 %v443_v38  ;;  %v375_v40 = vpop.f32.mrf.mxu0  ;;  %v601_v42 = vmul.f32 %v2596_v37, %v3120_v36 }
  0x8f   :  { %v420_v41 = vpop.f32.mrf.mxu1  ;;  %v2598_v44 = vpop.eup %2597 }
  0x90   :  { %2601 = vtanh.f32 %v420_v41  ;;  %v665_v43 = vsel %vm267_vm0, %v601_v42, 0.0  ;;  %v619_v46 = vmul.f32 %v2598_v44, %v3120_v36 }
  0x91   :  { %666 = vadd.xlane.f32.xlu0 %v665_v43  ;;  %2603 = vtanh.f32 %v375_v40 }
  0x92   :  { %v719_v55 = vsel %vm267_vm0, %v619_v46, 0.0 }
  0x94   :  { %v2600_v45 = vpop.eup %2599 }
  0x95   :  { %v445_v47 = vpop.f32.mrf.mxu2  ;;  %v629_v48 = vmul.f32 %v2600_v45, %v3120_v36 }
  0x96   :  { %v3130_v49 = vpop.f32.mrf.mxu3  ;;  %v2602_v50 = vpop.eup %2601 }
  0x97   :  { %v378_v51 = vpop.f32.mrf.mxu0  ;;  %v423_v52 = vpop.f32.mrf.mxu1  ;;  %v749_v53 = vsel %vm267_vm0, %v629_v48, 0.0  ;;  %v620_v54 = vmul.f32 %v2602_v50, %v3120_v36 }
  0x98   :  { %2605 = vtanh.f32 %v378_v51  ;;  %750 = vadd.xlane.f32.xlu2 %v749_v53  ;;  %v2604_v56 = vpop.eup %2603 }
  0x99   :  { %v722_v57 = vsel %vm267_vm0, %v620_v54, 0.0  ;;  %720 = vadd.xlane.f32.xlu0 %v719_v55  ;;  %2607 = vtanh.f32 %v445_v47  ;;  %v602_v58 = vmul.f32 %v2604_v56, %v3120_v36 }
  0x9a   :  { %723 = vadd.xlane.f32.xlu1 %v722_v57  ;;  %2609 = vtanh.f32 %v423_v52 }
  0x9b   :  { %v668_v1 = vsel %vm267_vm0, %v602_v58, 0.0 }
  0x9d   :  { %v448_v60 = vpop.f32.mrf.mxu2 }
  0x9e   :  { %v2606_v59 = vpop.eup %2605  ;;  %v493_v61 = vpop.f32.mrf.mxu3 }
  0x9f   :  { %v380_v62 = vpop.f32.mrf.mxu0  ;;  %v425_v63 = vpop.f32.mrf.mxu1  ;;  %v603_v0 = vmul.f32 %v2606_v59, %v3120_v36 }
  0xa0   :  { %2611 = vtanh.f32 %v425_v63  ;;  %v2608_v3 = vpop.eup %2607 }
  0xa1   :  { %v671_v2 = vsel %vm267_vm0, %v603_v0, 0.0  ;;  %669 = vadd.xlane.f32.xlu0 %v668_v1  ;;  %v2610_v4 = vpop.eup %2609  ;;  %2613 = vtanh.f32 %v448_v60  ;;  %v630_v5 = vmul.f32 %v2608_v3, %v3120_v36 }
  0xa2   :  { %672 = vadd.xlane.f32.xlu1 %v671_v2  ;;  %2615 = vtanh.f32 %v380_v62  ;;  %v621_v7 = vmul.f32 %v2610_v4, %v3120_v36 }
  0xa3   :  { %v752_v13 = vsel %vm267_vm0, %v630_v5, 0.0 }
  0xa4   :  { %v725_v16 = vsel %vm267_vm0, %v621_v7, 0.0 }
  0xa5   :  { %v450_v6 = vpop.f32.mrf.mxu2 }
  0xa6   :  { %v495_v8 = vpop.f32.mrf.mxu3  ;;  %v2612_v9 = vpop.eup %2611 }
  0xa7   :  { %v383_v10 = vpop.f32.mrf.mxu0  ;;  %v428_v11 = vpop.f32.mrf.mxu1  ;;  %v622_v12 = vmul.f32 %v2612_v9, %v3120_v36 }
  0xa8   :  { %2617 = vtanh.f32 %v383_v10  ;;  %v2614_v14 = vpop.eup %2613 }
  0xa9   :  { %2619 = vtanh.f32 %v493_v61  ;;  %v728_v15 = vsel %vm267_vm0, %v622_v12, 0.0  ;;  %753 = vadd.xlane.f32.xlu0 %v752_v13  ;;  %v2616_v17 = vpop.eup %2615  ;;  %v631_v18 = vmul.f32 %v2614_v14, %v3120_v36 }
  0xaa   :  { %2621 = vtanh.f32 %v428_v11  ;;  %729 = vadd.xlane.f32.xlu2 %v728_v15  ;;  %726 = vadd.xlane.f32.xlu1 %v725_v16  ;;  %v604_v21 = vmul.f32 %v2616_v17, %v3120_v36 }
  0xab   :  { %2623 = vtanh.f32 %v450_v6  ;;  %v755_v28 = vsel %vm267_vm0, %v631_v18, 0.0 }
  0xac   :  { %v674_v30 = vsel %vm267_vm0, %v604_v21, 0.0  ;;  %2625 = vtanh.f32 %v495_v8 }
  0xad   :  { %v453_v20 = vpop.f32.mrf.mxu2 }
  0xae   :  { %v2618_v19 = vpop.eup %2617  ;;  %v498_v22 = vpop.f32.mrf.mxu3 }
  0xaf   :  { %v385_v23 = vpop.f32.mrf.mxu0  ;;  %v430_v24 = vpop.f32.mrf.mxu1  ;;  %v605_v25 = vmul.f32 %v2618_v19, %v3120_v36 }
  0xb0   :  { %v2620_v26 = vpop.eup %2619  ;;  %2627 = vtanh.f32 %v385_v23 }
  0xb1   :  { %v2622_v27 = vpop.eup %2621  ;;  %v677_v29 = vsel %vm267_vm0, %v605_v25, 0.0  ;;  %756 = vadd.xlane.f32.xlu0 %v755_v28  ;;  %v649_v32 = vmul.f32 %v2620_v26, %v3120_v36  ;;  %2629 = vtanh.f32 %v453_v20 }
  0xb2   :  { %v2624_v31 = vpop.eup %2623  ;;  %675 = vadd.xlane.f32.xlu1 %v674_v30  ;;  %678 = vadd.xlane.f32.xlu2 %v677_v29  ;;  %v623_v33 = vmul.f32 %v2622_v27, %v3120_v36  ;;  %2631 = vtanh.f32 %v498_v22 }
  0xb3   :  { %v632_v35 = vmul.f32 %v2624_v31, %v3120_v36  ;;  %v809_v41 = vsel %vm267_vm0, %v649_v32, 0.0  ;;  %v2626_v43 = vpop.eup %2625  ;;  %2633 = vtanh.f32 %v430_v24 }
  0xb4   :  { %v731_v42 = vsel %vm267_vm0, %v623_v33, 0.0  ;;  %v650_v50 = vmul.f32 %v2626_v43, %v3120_v36 }
  0xb5   :  { %v455_v34 = vpop.f32.mrf.mxu2  ;;  %v758_v45 = vsel %vm267_vm0, %v632_v35, 0.0 }
  0xb6   :  { %v500_v37 = vpop.f32.mrf.mxu3  ;;  %v2628_v44 = vpop.eup %2627  ;;  %v812_v58 = vsel %vm267_vm0, %v650_v50, 0.0 }
  0xb7   :  { %v3155_v38 = vpop.f32.mrf.mxu0  ;;  %v3157_v40 = vpop.f32.mrf.mxu1  ;;  %v606_v47 = vmul.f32 %v2628_v44, %v3120_v36 }
  0xb8   :  { %v2630_v46 = vpop.eup %2629 }
  0xb9   :  { %810 = vadd.xlane.f32.xlu0 %v809_v41  ;;  %v633_v51 = vmul.f32 %v2630_v46, %v3120_v36  ;;  %v2632_v55 = vpop.eup %2631  ;;  %v680_v56 = vsel %vm267_vm0, %v606_v47, 0.0 }
  0xba   :  { %759 = vadd.xlane.f32.xlu1 %v758_v45  ;;  %732 = vadd.xlane.f32.xlu2 %v731_v42  ;;  %v2634_v57 = vpop.eup %2633  ;;  %v651_v60 = vmul.f32 %v2632_v55, %v3120_v36 }
  0xbb   :  { %v761_v59 = vsel %vm267_vm0, %v633_v51, 0.0  ;;  %v624_v62 = vmul.f32 %v2634_v57, %v3120_v36 }
  0xbc   :  { %v815_v5 = vsel %vm267_vm0, %v651_v60, 0.0 }
  0xbd   :  { %v458_v48 = vpop.f32.mrf.mxu2  ;;  %v734_v6 = vsel %vm267_vm0, %v624_v62, 0.0 }
  0xbe   :  { %v3165_v52 = vpop.f32.mrf.mxu3  ;;  %2635 = vtanh.f32 %v458_v48 }
  0xbf   :  { %v390_v53 = vpop.f32.mrf.mxu0  ;;  %v435_v54 = vpop.f32.mrf.mxu1  ;;  %2637 = vtanh.f32 %v455_v34 }
  0xc0   :  { %2639 = vtanh.f32 %v390_v53 }
  0xc1   :  { %681 = vadd.xlane.f32.xlu0 %v680_v56 }
  0xc2   :  { %813 = vadd.xlane.f32.xlu1 %v812_v58  ;;  %762 = vadd.xlane.f32.xlu2 %v761_v59 }
  0xc4   :  { %v2636_v61 = vpop.eup %2635 }
  0xc5   :  { %v460_v63 = vpop.f32.mrf.mxu2  ;;  %v635_v0 = vmul.f32 %v2636_v61, %v3120_v36  ;;  %v2638_v7 = vpop.eup %2637 }
  0xc6   :  { %v505_v1 = vpop.f32.mrf.mxu3  ;;  %2641 = vtanh.f32 %v460_v63  ;;  %v2640_v8 = vpop.eup %2639  ;;  %v634_v10 = vmul.f32 %v2638_v7, %v3120_v36 }
  0xc7   :  { %v393_v2 = vpop.f32.mrf.mxu0  ;;  %v3173_v3 = vpop.f32.mrf.mxu1  ;;  %v767_v4 = vsel %vm267_vm0, %v635_v0, 0.0  ;;  %2643 = vtanh.f32 %v500_v37  ;;  %v608_v13 = vmul.f32 %v2640_v8, %v3120_v36 }
  0xc8   :  { %2645 = vtanh.f32 %v435_v54  ;;  %v764_v16 = vsel %vm267_vm0, %v634_v10, 0.0 }
  0xc9   :  { %735 = vadd.xlane.f32.xlu0 %v734_v6  ;;  %v686_v20 = vsel %vm267_vm0, %v608_v13, 0.0 }
  0xca   :  { %768 = vadd.xlane.f32.xlu1 %v767_v4  ;;  %816 = vadd.xlane.f32.xlu2 %v815_v5 }
  0xcc   :  { %v2642_v9 = vpop.eup %2641 }
  0xcd   :  { %v3179_v11 = vpop.f32.mrf.mxu2  ;;  %v636_v12 = vmul.f32 %v2642_v9, %v3120_v36  ;;  %v2644_v17 = vpop.eup %2643 }
  0xce   :  { %v3183_v14 = vpop.f32.mrf.mxu3  ;;  %v2646_v21 = vpop.eup %2645  ;;  %v652_v22 = vmul.f32 %v2644_v17, %v3120_v36 }
  0xcf   :  { %v395_v15 = vpop.f32.mrf.mxu0  ;;  %v440_v18 = vpop.f32.mrf.mxu1  ;;  %v770_v19 = vsel %vm267_vm0, %v636_v12, 0.0  ;;  %v626_v25 = vmul.f32 %v2646_v21, %v3120_v36 }
  0xd0   :  { %2647 = vtanh.f32 %v395_v15  ;;  %v818_v30 = vsel %vm267_vm0, %v652_v22, 0.0 }
  0xd1   :  { %765 = vadd.xlane.f32.xlu0 %v764_v16  ;;  %2649 = vtanh.f32 %v3155_v38  ;;  %v740_v33 = vsel %vm267_vm0, %v626_v25, 0.0 }
  0xd2   :  { %771 = vadd.xlane.f32.xlu2 %v770_v19  ;;  %687 = vadd.xlane.f32.xlu1 %v686_v20  ;;  %2651 = vtanh.f32 %v505_v1 }
  0xd3   :  { %2653 = vtanh.f32 %v440_v18 }
  0xd4   :  { %2655 = vtanh.f32 %v3157_v40 }
  0xd5   :  { %v465_v24 = vpop.f32.mrf.mxu2  ;;  %2657 = vtanh.f32 %v393_v2 }
  0xd6   :  { %v2648_v23 = vpop.eup %2647  ;;  %v510_v28 = vpop.f32.mrf.mxu3  ;;  %2659 = vtanh.f32 %v465_v24 }
  0xd7   :  { %v398_v26 = vpop.f32.mrf.mxu0  ;;  %v610_v27 = vmul.f32 %v2648_v23, %v3120_v36  ;;  %v2650_v29 = vpop.eup %2649  ;;  %2661 = vtanh.f32 %v3165_v52 }
  0xd8   :  { %v2652_v32 = vpop.eup %2651  ;;  %v607_v35 = vmul.f32 %v2650_v29, %v3120_v36  ;;  %2663 = vtanh.f32 %v3173_v3 }
  0xd9   :  { %v692_v31 = vsel %vm267_vm0, %v610_v27, 0.0  ;;  %819 = vadd.xlane.f32.xlu0 %v818_v30  ;;  %v2654_v34 = vpop.eup %2653  ;;  %v654_v38 = vmul.f32 %v2652_v32, %v3120_v36  ;;  %2665 = vtanh.f32 %v510_v28 }
  0xda   :  { %741 = vadd.xlane.f32.xlu1 %v740_v33  ;;  %693 = vadd.xlane.f32.xlu2 %v692_v31  ;;  %v628_v41 = vmul.f32 %v2654_v34, %v3120_v36  ;;  %v2656_v44 = vpop.eup %2655  ;;  %v683_v45 = vsel %vm267_vm0, %v607_v35, 0.0  ;;  %2667 = vtanh.f32 %v3179_v11 }
  0xdb   :  { %v2658_v46 = vpop.eup %2657  ;;  %v824_v40 = vsel %vm267_vm0, %v654_v38, 0.0  ;;  %v625_v50 = vmul.f32 %v2656_v44, %v3120_v36 }
  0xdc   :  { %v746_v47 = vsel %vm267_vm0, %v628_v41, 0.0  ;;  %v2660_v48 = vpop.eup %2659  ;;  %v609_v53 = vmul.f32 %v2658_v46, %v3120_v36 }
  0xdd   :  { %v468_v37 = vpop.f32.mrf.mxu2  ;;  %v638_v54 = vmul.f32 %v2660_v48, %v3120_v36  ;;  %v2662_v56 = vpop.eup %2661  ;;  %v737_v57 = vsel %vm267_vm0, %v625_v50, 0.0 }
  0xde   :  { %v513_v43 = vpop.f32.mrf.mxu3  ;;  %v2664_v58 = vpop.eup %2663  ;;  %v689_v52 = vsel %vm267_vm0, %v609_v53, 0.0  ;;  %v653_v62 = vmul.f32 %v2662_v56, %v3120_v36 }
  0xdf   :  { %v400_v42 = vpop.f32.mrf.mxu0  ;;  %v776_v59 = vsel %vm267_vm0, %v638_v54, 0.0  ;;  %v2666_v61 = vpop.eup %2665  ;;  %v627_v0 = vmul.f32 %v2664_v58, %v3120_v36 }
  0xe0   :  { %2669 = vtanh.f32 %v400_v42  ;;  %v656_v1 = vmul.f32 %v2666_v61, %v3120_v36  ;;  %v2668_v3 = vpop.eup %2667  ;;  %v821_v4 = vsel %vm267_vm0, %v653_v62, 0.0 }
  0xe1   :  { %684 = vadd.xlane.f32.xlu0 %v683_v45  ;;  %2671 = vtanh.f32 %v398_v26  ;;  %v743_v6 = vsel %vm267_vm0, %v627_v0, 0.0  ;;  %v637_v12 = vmul.f32 %v2668_v3, %v3120_v36 }
  0xe2   :  { %825 = vadd.xlane.f32.xlu1 %v824_v40  ;;  %747 = vadd.xlane.f32.xlu2 %v746_v47  ;;  %v830_v7 = vsel %vm267_vm0, %v656_v1, 0.0  ;;  %2673 = vtanh.f32 %v3183_v14 }
  0xe3   :  { %v773_v14 = vsel %vm267_vm0, %v637_v12, 0.0 }
  0xe5   :  { %v470_v51 = vpop.f32.mrf.mxu2 }
  0xe6   :  { %v515_v60 = vpop.f32.mrf.mxu3  ;;  %v2670_v5 = vpop.eup %2669  ;;  %2675 = vtanh.f32 %v470_v51 }
  0xe7   :  { %v403_v55 = vpop.f32.mrf.mxu0  ;;  %v2672_v8 = vpop.eup %2671  ;;  %2677 = vtanh.f32 %v468_v37  ;;  %v612_v10 = vmul.f32 %v2670_v5, %v3120_v36 }
  0xe8   :  { %v611_v13 = vmul.f32 %v2672_v8, %v3120_v36  ;;  %v2674_v16 = vpop.eup %2673  ;;  %2679 = vtanh.f32 %v515_v60 }
  0xe9   :  { %738 = vadd.xlane.f32.xlu0 %v737_v57  ;;  %v698_v17 = vsel %vm267_vm0, %v612_v10, 0.0  ;;  %2681 = vtanh.f32 %v513_v43  ;;  %v655_v22 = vmul.f32 %v2674_v16, %v3120_v36 }
  0xea   :  { %690 = vadd.xlane.f32.xlu1 %v689_v52  ;;  %777 = vadd.xlane.f32.xlu2 %v776_v59  ;;  %v695_v19 = vsel %vm267_vm0, %v611_v13, 0.0 }
  0xeb   :  { %v827_v30 = vsel %vm267_vm0, %v655_v22, 0.0 }
  0xec   :  { %v2676_v18 = vpop.eup %2675 }
  0xed   :  { %v3212_v63 = vpop.f32.mrf.mxu2  ;;  %v2678_v20 = vpop.eup %2677  ;;  %v640_v21 = vmul.f32 %v2676_v18, %v3120_v36 }
  0xee   :  { %v3220_v9 = vpop.f32.mrf.mxu3  ;;  %v639_v23 = vmul.f32 %v2678_v20, %v3120_v36  ;;  %v2680_v25 = vpop.eup %2679 }
  0xef   :  { %v405_v2 = vpop.f32.mrf.mxu0  ;;  %v2682_v27 = vpop.eup %2681  ;;  %v782_v28 = vsel %vm267_vm0, %v640_v21, 0.0  ;;  %v658_v33 = vmul.f32 %v2680_v25, %v3120_v36 }
  0xf0   :  { %2683 = vtanh.f32 %v405_v2  ;;  %v779_v31 = vsel %vm267_vm0, %v639_v23, 0.0  ;;  %v657_v34 = vmul.f32 %v2682_v27, %v3120_v36 }
  0xf1   :  { %822 = vadd.xlane.f32.xlu0 %v821_v4  ;;  %2685 = vtanh.f32 %v403_v55  ;;  %v836_v38 = vsel %vm267_vm0, %v658_v33, 0.0 }
  0xf2   :  { %744 = vadd.xlane.f32.xlu1 %v743_v6  ;;  %831 = vadd.xlane.f32.xlu2 %v830_v7  ;;  %v833_v41 = vsel %vm267_vm0, %v657_v34, 0.0 }
  0xf5   :  { %v475_v11 = vpop.f32.mrf.mxu2 }
  0xf6   :  { %v520_v24 = vpop.f32.mrf.mxu3  ;;  %v2684_v32 = vpop.eup %2683  ;;  %2687 = vtanh.f32 %v475_v11 }
  0xf7   :  { %v3225_v15 = vpop.f32.mrf.mxu0  ;;  %v614_v37 = vmul.f32 %v2684_v32, %v3120_v36  ;;  %v2686_v43 = vpop.eup %2685 }
  0xf8   :  { %v613_v48 = vmul.f32 %v2686_v43, %v3120_v36 }
  0xf9   :  { %699 = vadd.xlane.f32.xlu0 %v698_v17  ;;  %v704_v46 = vsel %vm267_vm0, %v614_v37, 0.0 }
  0xfa   :  { %774 = vadd.xlane.f32.xlu1 %v773_v14  ;;  %696 = vadd.xlane.f32.xlu2 %v695_v19  ;;  %v701_v58 = vsel %vm267_vm0, %v613_v48, 0.0 }
  0xfc   :  { %v2688_v44 = vpop.eup %2687 }
  0xfd   :  { %v3233_v26 = vpop.f32.mrf.mxu2  ;;  %v642_v51 = vmul.f32 %v2688_v44, %v3120_v36 }
  0xfe   :  { %v3245_v42 = vpop.f32.mrf.mxu3 }
  0xff   :  { %v410_v29 = vpop.f32.mrf.mxu0  ;;  %v788_v59 = vsel %vm267_vm0, %v642_v51, 0.0 }
 0x100   :  { %2689 = vtanh.f32 %v410_v29 }
 0x101   :  { %783 = vadd.xlane.f32.xlu0 %v782_v28  ;;  %2691 = vtanh.f32 %v520_v24 }
 0x102   :  { %828 = vadd.xlane.f32.xlu1 %v827_v30  ;;  %780 = vadd.xlane.f32.xlu2 %v779_v31  ;;  %2693 = vtanh.f32 %v3212_v63 }
 0x104   :  { %v3240_v35 = vpop.xlane.xlu0 %666 }
 0x105   :  { %v480_v45 = vpop.f32.mrf.mxu2 }
 0x106   :  { %v2690_v40 = vpop.eup %2689  ;;  %2695 = vtanh.f32 %v480_v45  ;;  %v3255_v61 = vpop.f32.mrf.mxu3 }
 0x107   :  { %v616_v53 = vmul.f32 %v2690_v40, %v3120_v36  ;;  %v413_v55 = vpop.f32.mrf.mxu0  ;;  %v2692_v56 = vpop.eup %2691 }
 0x108   :  { %v2694_v52 = vpop.eup %2693  ;;  %2697 = vtanh.f32 %v413_v55  ;;  %v660_v1 = vmul.f32 %v2692_v56, %v3120_v36 }
 0x109   :  { %837 = vadd.xlane.f32.xlu0 %v836_v38  ;;  %v710_v60 = vsel %vm267_vm0, %v616_v53, 0.0  ;;  %2699 = vtanh.f32 %v3220_v9  ;;  %v641_v4 = vmul.f32 %v2694_v52, %v3120_v36 }
 0x10a   :  { %834 = vadd.xlane.f32.xlu2 %v833_v41  ;;  %705 = vadd.xlane.f32.xlu1 %v704_v46  ;;  %2701 = vtanh.f32 %v3225_v15  ;;  %v842_v11 = vsel %vm267_vm0, %v660_v1, 0.0 }
 0x10b   :  { %v3263_v5 = vpop.xlane.xlu2 %750  ;;  %v785_v15 = vsel %vm267_vm0, %v641_v4, 0.0  ;;  %2703 = vtanh.f32 %v3124_v39 }
 0x10c   :  { %v721_v47 = vpop.xlane.xlu0 %720  ;;  %v2696_v62 = vpop.eup %2695  ;;  %2705 = vtanh.f32 %v3233_v26 }
 0x10d   :  { %v724_v50 = vpop.xlane.xlu1 %723  ;;  %v483_v0 = vpop.f32.mrf.mxu2  ;;  %v644_v8 = vmul.f32 %v2696_v62, %v3120_v36 }
 0x10e   :  { %v920_v54 = vmax.f32 %v721_v47, %v724_v50  ;;  %v2698_v12 = vpop.eup %2697  ;;  %v3276_v23 = vpop.f32.mrf.mxu3 }
 0x10f   :  { %v2700_v16 = vpop.eup %2699  ;;  %v415_v18 = vpop.f32.mrf.mxu0  ;;  %v794_v14 = vsel %vm267_vm0, %v644_v8, 0.0  ;;  %v617_v22 = vmul.f32 %v2698_v12, %v3120_v36 }
 0x110   :  { %v921_v57 = vrot.slane %v920_v54, 4  ;;  %v2702_v19 = vpop.eup %2701  ;;  %2707 = vtanh.f32 %v415_v18  ;;  %v659_v28 = vmul.f32 %v2700_v16, %v3120_v36 }
 0x111   :  { %702 = vadd.xlane.f32.xlu0 %v701_v58  ;;  %v615_v32 = vmul.f32 %v2702_v19, %v3120_v36  ;;  %v713_v43 = vsel %vm267_vm0, %v617_v22, 0.0  ;;  %v2704_v44 = vpop.eup %2703 }
 0x112   :  { %v922_v63 = vmax.f32 %v920_v54, %v921_v57  ;;  %789 = vadd.xlane.f32.xlu1 %v788_v59  ;;  %711 = vadd.xlane.f32.xlu2 %v710_v60  ;;  %v839_v46 = vsel %vm267_vm0, %v659_v28, 0.0  ;;  %v2706_v40 = vpop.eup %2705  ;;  %v647_v57 = vmul.f32 %v2704_v44, %v3120_v36 }
 0x113   :  { %v643_v59 = vmul.f32 %v2706_v40, %v3120_v36 }
 0x114   :  { %v923_v2 = vrot.slane %v922_v63, 2  ;;  %v3260_v3 = vpop.xlane.xlu0 %669 }
 0x115   :  { %v857_v6 = vmax.f32 %v3240_v35, %v3260_v3  ;;  %v3267_v7 = vpop.xlane.xlu1 %672  ;;  %v485_v29 = vpop.f32.mrf.mxu2  ;;  %v791_v12 = vsel %vm267_vm0, %v643_v59, 0.0 }
 0x116   :  { %v924_v10 = vmax.f32 %v922_v63, %v923_v2  ;;  %2709 = vtanh.f32 %v485_v29  ;;  %v2708_v51 = vpop.eup %2707  ;;  %v530_v4 = vpop.f32.mrf.mxu3 }
 0x117   :  { %v858_v9 = vrot.slane %v857_v6, 4 }
 0x118   :  { %v925_v13 = vrot.slane %v924_v10, 1 }
 0x119   :  { %v859_v17 = vmax.f32 %v857_v6, %v858_v9  ;;  %786 = vadd.xlane.f32.xlu0 %v785_v15 }
 0x11a   :  { %v926_v20 = vmax.f32 %v924_v10, %v925_v13  ;;  %843 = vadd.xlane.f32.xlu1 %v842_v11  ;;  %795 = vadd.xlane.f32.xlu2 %v794_v14 }
 0x11b   :  { %v860_v21 = vrot.slane %v859_v17, 2 }
 0x11c   :  { %v1099_v24 = vsub.f32 %v721_v47, %v926_v20  ;;  %v1100_v25 = vsub.f32 %v724_v50, %v926_v20  ;;  %v3278_v27 = vpop.xlane.xlu0 %753  ;;  %v707_v50 = vsel %vm267_vm0, %v615_v32, 0.0  ;;  %v2710_v60 = vpop.eup %2709 }
 0x11d   :  { %v861_v30 = vmax.f32 %v859_v17, %v860_v21  ;;  %v3281_v39 = vpop.xlane.xlu2 %729  ;;  %v955_v31 = vmax.f32 %v3263_v5, %v3278_v27  ;;  %v3285_v26 = vpop.xlane.xlu1 %726  ;;  %v646_v19 = vmul.f32 %v2710_v60, %v3120_v36 }
 0x11e   :  { %v1181_v33 = vmul.f32 1.442695, %v1099_v24  ;;  %v1183_v34 = vmul.f32 1.442695, %v1100_v25  ;;  %v927_v37 = vmax.f32 %v3285_v26, %v3281_v39 }
 0x11f   :  { %v862_v38 = vrot.slane %v861_v30, 1  ;;  %v956_v41 = vrot.slane %v955_v31, 4 }
 0x120   :  { %2711 = vpow2.f32 %v1181_v33  ;;  %v928_v45 = vrot.slane %v927_v37, 4 }
 0x121   :  { %2713 = vpow2.f32 %v1183_v34  ;;  %v863_v47 = vmax.f32 %v861_v30, %v862_v38  ;;  %v957_v48 = vmax.f32 %v955_v31, %v956_v41  ;;  %840 = vadd.xlane.f32.xlu0 %v839_v46 }
 0x122   :  { %v929_v53 = vmax.f32 %v927_v37, %v928_v45  ;;  %2715 = vtanh.f32 %v483_v0  ;;  %708 = vadd.xlane.f32.xlu1 %v707_v50  ;;  %714 = vadd.xlane.f32.xlu2 %v713_v43 }
 0x123   :  { %v1081_v54 = vsub.f32 %v3240_v35, %v863_v47  ;;  %v1082_v55 = vsub.f32 %v3260_v3, %v863_v47  ;;  %v958_v56 = vrot.slane %v957_v48, 2  ;;  %2717 = vtanh.f32 %v3245_v42 }
 0x124   :  { %v930_v58 = vrot.slane %v929_v53, 2  ;;  %v3297_v52 = vpop.xlane.xlu0 %756  ;;  %2719 = vtanh.f32 %v3130_v49  ;;  %v618_v35 = vmul.f32 %v2708_v51, %v3120_v36  ;;  %v803_v49 = vsel %vm267_vm0, %v647_v57, 0.0 }
 0x125   :  { %v1145_v62 = vmul.f32 1.442695, %v1081_v54  ;;  %v959_v63 = vmax.f32 %v957_v48, %v958_v56  ;;  %v3301_v0 = vpop.xlane.xlu1 %675  ;;  %v1147_v2 = vmul.f32 1.442695, %v1082_v55  ;;  %v3326_v37 = vpop.xlane.xlu2 %678 }
 0x126   :  { %v3304_v1 = vpop.eup %2711  ;;  %v931_v3 = vmax.f32 %v929_v53, %v930_v58  ;;  %v864_v8 = vmax.f32 %v3267_v7, %v3301_v0  ;;  %v716_v16 = vsel %vm267_vm0, %v618_v35, 0.0 }
 0x127   :  { %v3306_v42 = vpop.eup %2713  ;;  %2721 = vpow2.f32 %v1145_v62  ;;  %v960_v6 = vrot.slane %v959_v63, 1 }
 0x128   :  { %v2716_v10 = vpop.eup %2715  ;;  %v1336_v9 = vadd.f32 %v3306_v42, %v3304_v1  ;;  %2723 = vpow2.f32 %v1147_v2  ;;  %v932_v11 = vrot.slane %v931_v3, 1  ;;  %v865_v15 = vrot.slane %v864_v8, 4 }
 0x129   :  { %v961_v13 = vmax.f32 %v959_v63, %v960_v6  ;;  %804 = vadd.xlane.f32.xlu0 %v803_v49  ;;  %2725 = vtanh.f32 %v530_v4  ;;  %v2718_v17 = vpop.eup %2717  ;;  %v645_v24 = vmul.f32 %v2716_v10, %v3120_v36 }
 0x12a   :  { %v1337_v18 = vrot.slane %v1336_v9, 4  ;;  %v933_v14 = vmax.f32 %v931_v3, %v932_v11  ;;  %792 = vadd.xlane.f32.xlu1 %v791_v12  ;;  %717 = vadd.xlane.f32.xlu2 %v716_v16  ;;  %v2720_v20 = vpop.eup %2719  ;;  %2727 = vtanh.f32 %v3255_v61  ;;  %v866_v30 = vmax.f32 %v864_v8, %v865_v15 }
 0x12b   :  { %v1109_v21 = vsub.f32 %v3263_v5, %v961_v13  ;;  %v1110_v22 = vsub.f32 %v3278_v27, %v961_v13  ;;  %v661_v61 = vmul.f32 %v2718_v17, %v3120_v36  ;;  %2729 = vtanh.f32 %v3276_v23  ;;  %v3342_v23 = vld [vmem:[%s4701_s1 + $0x48] sm:$0xff]  }
 0x12c   :  { %v1338_v25 = vadd.f32 %v1337_v18, %v1336_v9  ;;  %v1101_v28 = vsub.f32 %v3285_v26, %v933_v14  ;;  %v1102_v29 = vsub.f32 %v3281_v39, %v933_v14  ;;  %v3322_v31 = vpop.xlane.xlu0 %810  ;;  %v800_v39 = vsel %vm267_vm0, %v646_v19, 0.0 }
 0x12d   :  { %v3324_v32 = vpop.eup %2721  ;;  %v1201_v33 = vmul.f32 1.442695, %v1109_v21  ;;  %v1203_v34 = vmul.f32 1.442695, %v1110_v22  ;;  %v3328_v5 = vpop.xlane.xlu1 %759  ;;  %v648_v26 = vmul.f32 %v2720_v20, %v3120_v36  ;;  %v797_v45 = vsel %vm267_vm0, %v645_v24, 0.0 }
 0x12e   :  { %v3331_v27 = vpop.eup %2723  ;;  %v1339_v38 = vrot.slane %v1338_v25, 2  ;;  %v1185_v44 = vmul.f32 1.442695, %v1101_v28  ;;  %v1187_v40 = vmul.f32 1.442695, %v1102_v29  ;;  %v867_v47 = vrot.slane %v866_v30, 2  ;;  %v3369_v19 = vpop.xlane.xlu2 %732 }
 0x12f   :  { %v2726_v41 = vpop.eup %2725  ;;  %v1273_v43 = vadd.f32 %v3331_v27, %v3324_v32  ;;  %2731 = vpow2.f32 %v1201_v33  ;;  %v962_v51 = vmax.f32 %v3297_v52, %v3328_v5  ;;  %v845_v53 = vsel %vm267_vm0, %v661_v61, 0.0 }
 0x130   :  { %v1340_v46 = vadd.f32 %v1339_v38, %v1338_v25  ;;  %2733 = vpow2.f32 %v1203_v34  ;;  %v2728_v48 = vpop.eup %2727  ;;  %v868_v55 = vmax.f32 %v866_v30, %v867_v47  ;;  %v664_v56 = vmul.f32 %v2726_v41, %v3120_v36 }
 0x131   :  { %v1274_v50 = vrot.slane %v1273_v43, 4  ;;  %2735 = vpow2.f32 %v1185_v44  ;;  %801 = vadd.xlane.f32.xlu0 %v800_v39  ;;  %v963_v58 = vrot.slane %v962_v51, 4  ;;  %v806_v59 = vsel %vm267_vm0, %v648_v26, 0.0  ;;  %v2730_v60 = vpop.eup %2729 }
 0x132   :  { %v1341_v54 = vrot.slane %v1340_v46, 1  ;;  %2737 = vpow2.f32 %v1187_v40  ;;  %846 = vadd.xlane.f32.xlu1 %v845_v53  ;;  %798 = vadd.xlane.f32.xlu2 %v797_v45  ;;  %v1676_v62 = vunpack.c.l.bf16 %v3342_v23  ;;  %v869_v35 = vrot.slane %v868_v55, 1 }
 0x133   :  { %v1275_v57 = vadd.f32 %v1274_v50, %v1273_v43  ;;  %v662_v3 = vmul.f32 %v2728_v48, %v3120_v36  ;;  %v1677_v6 = vunpack.c.h.bf16 %v3342_v23  ;;  %v964_v49 = vmax.f32 %v962_v51, %v963_v58 }
 0x134   :  { %v1342_v63 = vadd.f32 %v1341_v54, %v1340_v46  ;;  %v3350_v2 = vpop.xlane.xlu0 %681  ;;  %v870_v12 = vmax.f32 %v868_v55, %v869_v35  ;;  %v854_v15 = vsel %vm267_vm0, %v664_v56, 0.0  ;;  %v663_v28 = vmul.f32 %v2730_v60, %v3120_v36  ;;  %v3389_v55 = vld [vmem:[%s4701_s1 + $0x4] sm:$0xff]  }
 0x135   :  { %v3353_v4 = vpop.eup %2731  ;;  %v1276_v8 = vrot.slane %v1275_v57, 2  ;;  %v3356_v10 = vpop.xlane.xlu1 %813  ;;  %v871_v9 = vmax.f32 %v3326_v37, %v3350_v2  ;;  %v965_v14 = vrot.slane %v964_v49, 2  ;;  %v848_v25 = vsel %vm267_vm0, %v662_v3, 0.0 }
 0x136   :  { %v3360_v11 = vpop.eup %2733  ;;  %2739 = vrcp.f32 %v1342_v63  ;;  %v1025_v13 = vmax.f32 %v3322_v31, %v3356_v10  ;;  %v1083_v22 = vsub.f32 %v3267_v7, %v870_v12  ;;  %v1084_v24 = vsub.f32 %v3301_v0, %v870_v12 }
 0x137   :  { %v3365_v16 = vpop.eup %2735  ;;  %v1277_v17 = vadd.f32 %v1276_v8, %v1275_v57  ;;  %v1371_v18 = vadd.f32 %v3360_v11, %v3353_v4  ;;  %v872_v20 = vrot.slane %v871_v9, 4  ;;  %v966_v34 = vmax.f32 %v964_v49, %v965_v14 }
 0x138   :  { %v3371_v21 = vpop.eup %2737  ;;  %v1149_v61 = vmul.f32 1.442695, %v1083_v22  ;;  %v1151_v38 = vmul.f32 1.442695, %v1084_v24  ;;  %v1026_v39 = vrot.slane %v1025_v13, 4  ;;  %v851_v46 = vsel %vm267_vm0, %v663_v28, 0.0 }
 0x139   :  { %v1278_v29 = vrot.slane %v1277_v17, 1  ;;  %v1372_v30 = vrot.slane %v1371_v18, 4  ;;  %v1343_v33 = vadd.f32 %v3371_v21, %v3365_v16  ;;  %855 = vadd.xlane.f32.xlu0 %v854_v15  ;;  %v873_v26 = vmax.f32 %v871_v9, %v872_v20 }
 0x13a   :  { %807 = vadd.xlane.f32.xlu1 %v806_v59  ;;  %849 = vadd.xlane.f32.xlu2 %v848_v25  ;;  %v967_v43 = vrot.slane %v966_v34, 1  ;;  %2741 = vpow2.f32 %v1149_v61  ;;  %v1027_v36 = vmax.f32 %v1025_v13, %v1026_v39  ;;  %v1659_v12 = vunpack.c.l.bf16 %v3389_v55 }
 0x13b   :  { %v1279_v7 = vadd.f32 %v1278_v29, %v1277_v17  ;;  %v1373_v41 = vadd.f32 %v1372_v30, %v1371_v18  ;;  %v1344_v0 = vrot.slane %v1343_v33, 4  ;;  %v874_v45 = vrot.slane %v873_v26, 2 }
 0x13c   :  { %v2740_v44 = vpop.eup %2739  ;;  %v968_v50 = vmax.f32 %v966_v34, %v967_v43  ;;  %v1028_v51 = vrot.slane %v1027_v36, 2 }
 0x13d   :  { %v1547_v40 = vmul.f32 %v2740_v44, %v3304_v1  ;;  %v1548_v47 = vmul.f32 %v2740_v44, %v3306_v42  ;;  %2743 = vrcp.f32 %v1279_v7  ;;  %v1374_v48 = vrot.slane %v1373_v41, 2  ;;  %v27_v1 = vld [vmem:[%s4701_s1] sm:$0xf] }
 0x13e   :  { %v1345_v23 = vadd.f32 %v1344_v0, %v1343_v33  ;;  %2745 = vpow2.f32 %v1151_v38  ;;  %v875_v56 = vmax.f32 %v873_v26, %v874_v45  ;;  %v1111_v58 = vsub.f32 %v3297_v52, %v968_v50  ;;  %v47_v0 = vld [vmem:[%s4701_s1 + $0x50] sm:$0xff]  }
 0x13f   :  { %1612 = vst.msk [vmem:[%s4707_s7 + $0x90] sm:$0xff] %vm1593_vm1, %v1547_v40  ;;  %v1740_v53 = vmul.f32 %v1676_v62, %v1547_v40  ;;  %v1741_v54 = vmul.f32 %v1677_v6, %v1548_v47  ;;  %v1375_v42 = vadd.f32 %v1374_v48, %v1373_v41  ;;  %v1112_v59 = vsub.f32 %v3328_v5, %v968_v50  ;;  %v3400_v62 = vpop.xlane.xlu0 %735  ;;  %v3404_v6 = vpop.xlane.xlu2 %762 }
 0x140   :  { %1613 = vst.msk [vmem:[%s4707_s7 + $0x98] sm:$0xff] %vm1593_vm1, %v1548_v47  ;;  %v1346_v57 = vrot.slane %v1345_v23, 2  ;;  %v1029_v60 = vmax.f32 %v1027_v36, %v1028_v51  ;;  %v876_v8 = vrot.slane %v875_v56, 1  ;;  %v3406_v49 = vpop.eup %2741  ;;  %v1658_v13 = vunpack.c.l.bf16 %v27_v1 }
 0x141   :  { %v1867_v63 = vsel %vm267_vm0, %v1740_v53, 0.0  ;;  %v1868_v35 = vsel %vm267_vm0, %v1741_v54, 0.0  ;;  %v1376_v3 = vrot.slane %v1375_v42, 1  ;;  %v1205_v17 = vmul.f32 1.442695, %v1111_v58 }
 0x142   :  { %v1869_v9 = vadd.f32 %v1868_v35, %v1867_v63  ;;  %v1347_v52 = vadd.f32 %v1346_v57, %v1345_v23  ;;  %852 = vadd.xlane.f32.xlu2 %v851_v46  ;;  %v1030_v18 = vrot.slane %v1029_v60, 1  ;;  %v1207_v29 = vmul.f32 1.442695, %v1112_v59 }
 0x143   :  { %v2744_v5 = vpop.eup %2743  ;;  %v1377_v15 = vadd.f32 %v1376_v3, %v1375_v42  ;;  %v3415_v30 = vmax.f32 %v875_v56, %v876_v8  ;;  %v1678_v51 = vunpack.c.l.bf16 %v47_v0  ;;  %v1679_v53 = vunpack.c.h.bf16 %v47_v0 }
 0x144   :  { %v3409_v14 = vpop.eup %2745  ;;  %v1870_v20 = vrot.slane %v1869_v9, 4  ;;  %v1529_v22 = vmul.f32 %v2744_v5, %v3324_v32  ;;  %v1530_v24 = vmul.f32 %v2744_v5, %v3331_v27  ;;  %v1348_v25 = vrot.slane %v1347_v52, 1  ;;  %v55_v32 = vld [vmem:[%s4701_s1 + $0x70] sm:$0xff]  }
 0x145   :  { %2747 = vrcp.f32 %v1377_v15  ;;  %v1280_v28 = vadd.f32 %v3409_v14, %v3406_v49  ;;  %v1031_v39 = vmax.f32 %v1029_v60, %v1030_v18  ;;  %v1085_v36 = vsub.f32 %v3326_v37, %v3415_v30 }
 0x146   :  { %v1871_v33 = vadd.f32 %v1870_v20, %v1869_v9  ;;  %1594 = vst.msk [vmem:[%s4707_s7] sm:$0xff] %vm1593_vm1, %v1529_v22  ;;  %v1722_v34 = vmul.f32 %v1658_v13, %v1529_v22  ;;  %v1723_v61 = vmul.f32 %v1659_v12, %v1530_v24  ;;  %v1349_v38 = vadd.f32 %v1348_v25, %v1347_v52 }
 0x147   :  { %1595 = vst.msk [vmem:[%s4707_s7 + $0x8] sm:$0xff] %vm1593_vm1, %v1530_v24  ;;  %v1281_v27 = vrot.slane %v1280_v28, 4  ;;  %2749 = vpow2.f32 %v1205_v17  ;;  %v1686_v46 = vunpack.c.l.bf16 %v55_v32  ;;  %v1687_v40 = vunpack.c.h.bf16 %v55_v32  ;;  %v3436_v48 = vpop.xlane.xlu0 %765  ;;  %v3438_v1 = vpop.xlane.xlu2 %816 }
 0x148   :  { %v1872_v26 = vrot.slane %v1871_v33, 2  ;;  %v1786_v7 = vsel %vm267_vm0, %v1722_v34, 0.0  ;;  %v1787_v41 = vsel %vm267_vm0, %v1723_v61, 0.0  ;;  %2751 = vrcp.f32 %v1349_v38 }
 0x149   :  { %v1788_v43 = vadd.f32 %v1787_v41, %v1786_v7  ;;  %v1282_v44 = vadd.f32 %v1281_v27, %v1280_v28  ;;  %2753 = vpow2.f32 %v1207_v29  ;;  %v1129_v47 = vsub.f32 %v3322_v31, %v1031_v39  ;;  %v3482_v27 = vld [vmem:[%s4701_s1 + $0xc] sm:$0xff]   ;;  %v3489_v41 = vld [vmem:[%s4701_s1 + $0x78] sm:$0xff]  }
 0x14a   :  { %v1873_v45 = vadd.f32 %v1872_v26, %v1871_v33  ;;  %v1130_v37 = vsub.f32 %v3356_v10, %v1031_v39  ;;  %v934_v57 = vmax.f32 %v3369_v19, %v3400_v62  ;;  %v1086_v60 = vsub.f32 %v3350_v2, %v3415_v30 }
 0x14b   :  { %v2748_v23 = vpop.eup %2747  ;;  %v1789_v50 = vrot.slane %v1788_v43, 4  ;;  %v1283_v54 = vrot.slane %v1282_v44, 2  ;;  %v1153_v63 = vmul.f32 1.442695, %v1085_v36  ;;  %v3497_v36 = vld [vmem:[%s4701_s1 + $0xc0] sm:$0xff]  }
 0x14c   :  { %v1557_v42 = vmul.f32 %v2748_v23, %v3353_v4  ;;  %v1558_v56 = vmul.f32 %v2748_v23, %v3360_v11  ;;  %v1874_v3 = vrot.slane %v1873_v45, 1  ;;  %v1241_v11 = vmul.f32 1.442695, %v1129_v47 }
 0x14d   :  { %v3445_v58 = vpop.eup %2749  ;;  %v1790_v31 = vadd.f32 %v1789_v50, %v1788_v43  ;;  %v1284_v59 = vadd.f32 %v1283_v54, %v1282_v44  ;;  %v1243_v17 = vmul.f32 1.442695, %v1130_v37  ;;  %v935_v28 = vrot.slane %v934_v57, 4  ;;  %v3491_v43 = vpop.xlane.xlu1 %768 }
 0x14e   :  { %v2752_v35 = vpop.eup %2751  ;;  %1622 = vst.msk [vmem:[%s4707_s7 + $0xe0] sm:$0xff] %vm1593_vm1, %v1557_v42  ;;  %v1750_v4 = vmul.f32 %v1686_v46, %v1557_v42  ;;  %v1751_v10 = vmul.f32 %v1687_v40, %v1558_v56  ;;  %2755 = vpow2.f32 %v1241_v11  ;;  %v1155_v33 = vmul.f32 1.442695, %v1086_v60 }
 0x14f   :  { %v3453_v8 = vpop.eup %2753  ;;  %v1791_v9 = vrot.slane %v1790_v31, 2  ;;  %1623 = vst.msk [vmem:[%s4707_s7 + $0xe8] sm:$0xff] %vm1593_vm1, %v1558_v56  ;;  %v1549_v2 = vmul.f32 %v2752_v35, %v3365_v16  ;;  %v1550_v12 = vmul.f32 %v2752_v35, %v3371_v21  ;;  %v1285_v13 = vrot.slane %v1284_v59, 1  ;;  %v3477_v38 = vpop.xlane.xlu0 %819 }
 0x150   :  { %v1912_v52 = vsel %vm267_vm0, %v1750_v4, 0.0  ;;  %v1913_v5 = vsel %vm267_vm0, %v1751_v10, 0.0  ;;  %v1378_v15 = vadd.f32 %v3453_v8, %v3445_v58  ;;  %v1875_v21 = vadd.f32 %v1874_v3, %v1873_v45  ;;  %v3484_v39 = vpop.xlane.xlu2 %771 }
 0x151   :  { %v1792_v18 = vadd.f32 %v1791_v9, %v1790_v31  ;;  %v3465_v20 = vadd.f32 %v1913_v5, %v1912_v52  ;;  %1614 = vst.msk [vmem:[%s4707_s7 + $0xa0] sm:$0xff] %vm1593_vm1, %v1549_v2  ;;  %v1742_v16 = vmul.f32 %v1678_v51, %v1549_v2  ;;  %v1743_v22 = vmul.f32 %v1679_v53, %v1550_v12 }
 0x152   :  { %1615 = vst.msk [vmem:[%s4707_s7 + $0xa8] sm:$0xff] %vm1593_vm1, %v1550_v12  ;;  %v1286_v24 = vadd.f32 %v1285_v13, %v1284_v59  ;;  %v1379_v25 = vrot.slane %v1378_v15, 4  ;;  %v2083_v26 = vpack.c.bf16 %v1875_v21, %v1875_v21  ;;  %v1660_v44 = vunpack.c.h.bf16 %v3389_v55 }
 0x153   :  { %v1876_v29 = vsel %vm267_vm0, %v1742_v16, 0.0  ;;  %v1877_v30 = vsel %vm267_vm0, %v1743_v22, 0.0  ;;  %v1793_v32 = vrot.slane %v1792_v18, 1  ;;  %v936_v45 = vmax.f32 %v934_v57, %v935_v28 }
 0x154   :  { %v1878_v34 = vadd.f32 %v1877_v30, %v1876_v29  ;;  %2757 = vrcp.f32 %v1286_v24  ;;  %v1380_v61 = vadd.f32 %v1379_v25, %v1378_v15  ;;  %v1661_v40 = vunpack.c.l.bf16 %v3482_v27  ;;  %v3502_v50 = vpop.eup %2755 }
 0x155   :  { %2759 = vpow2.f32 %v1243_v17  ;;  %v976_v23 = vmax.f32 %v3491_v43, %v3484_v39  ;;  %v1794_v51 = vadd.f32 %v1793_v32, %v1792_v18  ;;  %v1688_v53 = vunpack.c.l.bf16 %v3489_v41 }
 0x156   :  { %v1879_v7 = vrot.slane %v1878_v34, 4  ;;  %v1381_v0 = vrot.slane %v1380_v61, 2  ;;  %2761 = vpow2.f32 %v1153_v63  ;;  %v1689_v55 = vunpack.c.h.bf16 %v3489_v41 }
 0x157   :  { %2763 = vpow2.f32 %v1155_v33  ;;  %v937_v54 = vrot.slane %v936_v45, 2  ;;  %v3506_v56 = vperm.slane %v2083_v26, 0  ;;  %v1706_v57 = vunpack.c.l.bf16 %v3497_v36  ;;  %v3532_v18 = vpop.xlane.xlu0 %684  ;;  %v3536_v33 = vpop.xlane.xlu1 %687 }
 0x158   :  { %v1880_v46 = vadd.f32 %v1879_v7, %v1878_v34  ;;  %v1382_v47 = vadd.f32 %v1381_v0, %v1380_v61  ;;  %v969_v31 = vmax.f32 %v3404_v6, %v3436_v48  ;;  %v977_v3 = vrot.slane %v976_v23, 4 }
 0x159   :  { %v938_v35 = vmax.f32 %v936_v45, %v937_v54  ;;  %v1915_v10 = vrot.slane %v3465_v20, 4  ;;  %v2074_v13 = vpack.c.bf16 %v1794_v51, %v1794_v51 }
 0x15a   :  { %v2758_v42 = vpop.eup %2757  ;;  %v1383_v37 = vrot.slane %v1382_v47, 1  ;;  %v1881_v11 = vrot.slane %v1880_v46, 2  ;;  %v970_v17 = vrot.slane %v969_v31, 4  ;;  %v978_v24 = vmax.f32 %v976_v23, %v977_v3 }
 0x15b   :  { %v3511_v59 = vpop.eup %2759  ;;  %v1531_v60 = vmul.f32 %v2758_v42, %v3406_v49  ;;  %v1532_v63 = vmul.f32 %v2758_v42, %v3409_v14  ;;  %v939_v52 = vrot.slane %v938_v35, 1  ;;  %v3539_v34 = vadd.f32 %v1915_v10, %v3465_v20 }
 0x15c   :  { %v3515_v4 = vpop.eup %2761  ;;  %v1384_v9 = vadd.f32 %v1383_v37, %v1382_v47  ;;  %v1441_v2 = vadd.f32 %v3511_v59, %v3502_v50  ;;  %v1882_v25 = vadd.f32 %v1881_v11, %v1880_v46  ;;  %v979_v26 = vrot.slane %v978_v24, 2 }
 0x15d   :  { %v3520_v12 = vpop.eup %2763  ;;  %1596 = vst.msk [vmem:[%s4707_s7 + $0x10] sm:$0xff] %vm1593_vm1, %v1531_v60  ;;  %v1724_v49 = vmul.f32 %v1660_v44, %v1531_v60  ;;  %v1725_v14 = vmul.f32 %v1661_v40, %v1532_v63  ;;  %v940_v21 = vmax.f32 %v938_v35, %v939_v52  ;;  %v971_v45 = vmax.f32 %v969_v31, %v970_v17 }
 0x15e   :  { %1597 = vst.msk [vmem:[%s4707_s7 + $0x18] sm:$0xff] %vm1593_vm1, %v1532_v63  ;;  %2765 = vrcp.f32 %v1384_v9  ;;  %v1442_v5 = vrot.slane %v1441_v2, 4  ;;  %v1287_v15 = vadd.f32 %v3520_v12, %v3515_v4  ;;  %v3543_v40 = vperm.slane %v2074_v13, 0 }
 0x15f   :  { %v1795_v16 = vsel %vm267_vm0, %v1724_v49, 0.0  ;;  %v1796_v22 = vsel %vm267_vm0, %v1725_v14, 0.0  ;;  %v1103_v61 = vsub.f32 %v3369_v19, %v940_v21  ;;  %v1104_v32 = vsub.f32 %v3400_v62, %v940_v21  ;;  %v3561_v49 = vpop.xlane.xlu0 %738 }
 0x160   :  { %v1797_v28 = vadd.f32 %v1796_v22, %v1795_v16  ;;  %v1443_v29 = vadd.f32 %v1442_v5, %v1441_v2  ;;  %v1288_v30 = vrot.slane %v1287_v15, 4  ;;  %v980_v23 = vmax.f32 %v978_v24, %v979_v26  ;;  %v3572_v5 = vld [vmem:[%s4701_s1 + $0x14] sm:$0xff]   ;;  %v3574_v16 = vpop.xlane.xlu1 %741 }
 0x161   :  { %v1189_v46 = vmul.f32 1.442695, %v1103_v61  ;;  %v1191_v47 = vmul.f32 1.442695, %v1104_v32  ;;  %v1883_v54 = vrot.slane %v1882_v25, 1  ;;  %v972_v3 = vrot.slane %v971_v45, 2 }
 0x162   :  { %v1798_v7 = vrot.slane %v1797_v28, 4  ;;  %v1444_v0 = vrot.slane %v1443_v29, 2  ;;  %v1289_v44 = vadd.f32 %v1288_v30, %v1287_v15  ;;  %v981_v62 = vrot.slane %v980_v23, 1 }
 0x163   :  { %2767 = vpow2.f32 %v1189_v46  ;;  %v1032_v31 = vmax.f32 %v3438_v1, %v3477_v38  ;;  %v1884_v11 = vadd.f32 %v1883_v54, %v1882_v25  ;;  %v973_v17 = vmax.f32 %v971_v45, %v972_v3 }
 0x164   :  { %v2766_v51 = vpop.eup %2765  ;;  %v1799_v42 = vadd.f32 %v1798_v7, %v1797_v28  ;;  %v1445_v37 = vadd.f32 %v1444_v0, %v1443_v29  ;;  %v1290_v20 = vrot.slane %v1289_v44, 2  ;;  %2769 = vpow2.f32 %v1191_v47  ;;  %v3592_v7 = vld [vmem:[%s4701_s1 + $0x58] sm:$0xff]  }
 0x165   :  { %v1559_v60 = vmul.f32 %v2766_v51, %v3445_v58  ;;  %v1560_v19 = vmul.f32 %v2766_v51, %v3453_v8  ;;  %v982_v8 = vmax.f32 %v980_v23, %v981_v62  ;;  %v2084_v28 = vpack.c.bf16 %v1884_v11, %v1884_v11 }
 0x166   :  { %v1446_v63 = vrot.slane %v1445_v37, 1  ;;  %v1291_v35 = vadd.f32 %v1290_v20, %v1289_v44  ;;  %v1800_v9 = vrot.slane %v1799_v42, 2  ;;  %v1707_v29 = vunpack.c.h.bf16 %v3497_v36 }
 0x167   :  { %1624 = vst.msk [vmem:[%s4707_s7 + $0xf0] sm:$0xff] %vm1593_vm1, %v1559_v60  ;;  %v1752_v10 = vmul.f32 %v1688_v53, %v1559_v60  ;;  %v1753_v58 = vmul.f32 %v1689_v55, %v1560_v19  ;;  %v1115_v41 = vsub.f32 %v3491_v43, %v982_v8  ;;  %v1116_v55 = vsub.f32 %v3484_v39, %v982_v8 }
 0x168   :  { %1625 = vst.msk [vmem:[%s4707_s7 + $0xf8] sm:$0xff] %vm1593_vm1, %v1560_v19  ;;  %v1447_v2 = vadd.f32 %v1446_v63, %v1445_v37  ;;  %v1292_v13 = vrot.slane %v1291_v35, 1  ;;  %v878_v43 = vmax.f32 %v3532_v18, %v3536_v33  ;;  %v941_v39 = vmax.f32 %v3561_v49, %v3574_v16  ;;  %v3624_v36 = vpop.xlane.xlu1 %825 }
 0x169   :  { %v1921_v14 = vsel %vm267_vm0, %v1752_v10, 0.0  ;;  %v1922_v53 = vsel %vm267_vm0, %v1753_v58, 0.0  ;;  %v3576_v22 = vpop.eup %2767  ;;  %v1213_v21 = vmul.f32 1.442695, %v1115_v41  ;;  %v1215_v24 = vmul.f32 1.442695, %v1116_v55 }
 0x16a   :  { %v3567_v52 = vadd.f32 %v1922_v53, %v1921_v14  ;;  %2771 = vrcp.f32 %v1447_v2  ;;  %v1293_v15 = vadd.f32 %v1292_v13, %v1291_v35  ;;  %v3584_v30 = vpop.eup %2769  ;;  %v1662_v32 = vunpack.c.h.bf16 %v3482_v27 }
 0x16b   :  { %v1663_v26 = vunpack.c.l.bf16 %v3572_v5  ;;  %v3595_v44 = vadd.f32 %v1800_v9, %v1799_v42  ;;  %v1350_v45 = vadd.f32 %v3584_v30, %v3576_v22  ;;  %v974_v46 = vrot.slane %v973_v17, 1 }
 0x16c   :  { %2773 = vrcp.f32 %v1293_v15  ;;  %v1033_v47 = vrot.slane %v1032_v31, 4  ;;  %v879_v23 = vrot.slane %v878_v43, 4  ;;  %v942_v27 = vrot.slane %v941_v39, 4 }
 0x16d   :  { %2775 = vpow2.f32 %v1213_v21  ;;  %v3599_v54 = vperm.slane %v2084_v28, 0  ;;  %v1680_v37 = vunpack.c.l.bf16 %v3592_v7  ;;  %v1681_v20 = vunpack.c.h.bf16 %v3592_v7 }
 0x16e   :  { %2777 = vpow2.f32 %v1215_v24  ;;  %v1351_v60 = vrot.slane %v1350_v45, 4  ;;  %v975_v62 = vmax.f32 %v973_v17, %v974_v46  ;;  %v1034_v63 = vmax.f32 %v1032_v31, %v1033_v47 }
 0x16f   :  { %v1802_v3 = vrot.slane %v3595_v44, 1  ;;  %v880_v58 = vmax.f32 %v878_v43, %v879_v23  ;;  %v943_v8 = vmax.f32 %v941_v39, %v942_v27 }
 0x170   :  { %v2772_v51 = vpop.eup %2771  ;;  %v1352_v10 = vadd.f32 %v1351_v60, %v1350_v45  ;;  %v1113_v14 = vsub.f32 %v3404_v6, %v975_v62  ;;  %v1114_v53 = vsub.f32 %v3436_v48, %v975_v62  ;;  %v1035_v41 = vrot.slane %v1034_v63, 2 }
 0x171   :  { %v1577_v19 = vmul.f32 %v2772_v51, %v3502_v50  ;;  %v1578_v42 = vmul.f32 %v2772_v51, %v3511_v59  ;;  %v881_v46 = vrot.slane %v880_v58, 2  ;;  %v944_v47 = vrot.slane %v943_v8, 2 }
 0x172   :  { %v2774_v35 = vpop.eup %2773  ;;  %v1353_v13 = vrot.slane %v1352_v10, 2  ;;  %v1209_v17 = vmul.f32 1.442695, %v1113_v14  ;;  %v1211_v43 = vmul.f32 1.442695, %v1114_v53  ;;  %v1036_v39 = vmax.f32 %v1034_v63, %v1035_v41  ;;  %v3649_v41 = vpop.xlane.xlu1 %690 }
 0x173   :  { %v3606_v11 = vpop.eup %2775  ;;  %1642 = vst.msk [vmem:[%s4707_s7 + $0x180] sm:$0xff] %vm1593_vm1, %v1577_v19  ;;  %v1770_v50 = vmul.f32 %v1706_v57, %v1577_v19  ;;  %v1771_v9 = vmul.f32 %v1707_v29, %v1578_v42  ;;  %v1533_v59 = vmul.f32 %v2774_v35, %v3515_v4  ;;  %v1534_v31 = vmul.f32 %v2774_v35, %v3520_v12 }
 0x174   :  { %v3616_v2 = vpop.eup %2777  ;;  %1643 = vst.msk [vmem:[%s4707_s7 + $0x188] sm:$0xff] %vm1593_vm1, %v1578_v42  ;;  %v1354_v6 = vadd.f32 %v1353_v13, %v1352_v10  ;;  %2779 = vpow2.f32 %v1209_v17  ;;  %v1037_v45 = vrot.slane %v1036_v39, 1  ;;  %v882_v42 = vmax.f32 %v880_v58, %v881_v46  ;;  %v3656_v17 = vpop.xlane.xlu2 %693 }
 0x175   :  { %v2002_v57 = vsel %vm267_vm0, %v1770_v50, 0.0  ;;  %v2003_v4 = vsel %vm267_vm0, %v1771_v9, 0.0  ;;  %1598 = vst.msk [vmem:[%s4707_s7 + $0x20] sm:$0xff] %vm1593_vm1, %v1533_v59  ;;  %v1726_v12 = vmul.f32 %v1662_v32, %v1533_v59  ;;  %v1727_v55 = vmul.f32 %v1663_v26, %v1534_v31  ;;  %v3644_v9 = vld [vmem:[%s4701_s1 + $0x88] sm:$0xff]  }
 0x176   :  { %v2004_v15 = vadd.f32 %v2003_v4, %v2002_v57  ;;  %1599 = vst.msk [vmem:[%s4707_s7 + $0x28] sm:$0xff] %vm1593_vm1, %v1534_v31  ;;  %v1392_v48 = vadd.f32 %v3616_v2, %v3606_v11  ;;  %v1355_v32 = vrot.slane %v1354_v6, 1  ;;  %2781 = vpow2.f32 %v1211_v43 }
 0x177   :  { %v1804_v21 = vsel %vm267_vm0, %v1726_v12, 0.0  ;;  %v1805_v24 = vsel %vm267_vm0, %v1727_v55, 0.0  ;;  %v1038_v19 = vmax.f32 %v1036_v39, %v1037_v45  ;;  %v945_v62 = vmax.f32 %v943_v8, %v944_v47 }
 0x178   :  { %v2005_v28 = vrot.slane %v2004_v15, 4  ;;  %v1806_v29 = vadd.f32 %v1805_v24, %v1804_v21  ;;  %v1393_v26 = vrot.slane %v1392_v48, 4  ;;  %v1356_v51 = vadd.f32 %v1355_v32, %v1354_v6 }
 0x179   :  { %v1131_v59 = vsub.f32 %v3438_v1, %v1038_v19  ;;  %v1132_v31 = vsub.f32 %v3477_v38, %v1038_v19  ;;  %v883_v13 = vrot.slane %v882_v42, 1  ;;  %v1803_v14 = vadd.f32 %v1802_v3, %v3595_v44 }
 0x17a   :  { %v2006_v23 = vadd.f32 %v2005_v28, %v2004_v15  ;;  %v1807_v27 = vrot.slane %v1806_v29, 4  ;;  %v1394_v60 = vadd.f32 %v1393_v26, %v1392_v48  ;;  %2783 = vrcp.f32 %v1356_v51  ;;  %v3651_v57 = vpop.eup %2779 }
 0x17b   :  { %v946_v53 = vrot.slane %v945_v62, 1  ;;  %v1924_v4 = vrot.slane %v3567_v52, 4  ;;  %v1245_v12 = vmul.f32 1.442695, %v1131_v59  ;;  %v1247_v55 = vmul.f32 1.442695, %v1132_v31 }
 0x17c   :  { %v2007_v35 = vrot.slane %v2006_v23, 2  ;;  %v1808_v10 = vadd.f32 %v1807_v27, %v1806_v29  ;;  %v1395_v63 = vrot.slane %v1394_v60, 2  ;;  %v884_v15 = vmax.f32 %v882_v42, %v883_v13  ;;  %v3658_v44 = vpop.eup %2781 }
 0x17d   :  { %v1692_v1 = vunpack.c.l.bf16 %v3644_v9  ;;  %v1693_v38 = vunpack.c.h.bf16 %v3644_v9  ;;  %2785 = vpow2.f32 %v1245_v12  ;;  %v885_v24 = vmax.f32 %v3649_v41, %v3656_v17 }
 0x17e   :  { %v1809_v58 = vrot.slane %v1808_v10, 2  ;;  %v1396_v8 = vadd.f32 %v1395_v63, %v1394_v60  ;;  %v2008_v6 = vadd.f32 %v2007_v35, %v2006_v23  ;;  %v1087_v3 = vsub.f32 %v3532_v18, %v884_v15 }
 0x17f   :  { %v1088_v21 = vsub.f32 %v3536_v33, %v884_v15  ;;  %v1385_v29 = vadd.f32 %v3658_v44, %v3651_v57  ;;  %v947_v32 = vmax.f32 %v945_v62, %v946_v53  ;;  %2787 = vpow2.f32 %v1247_v55  ;;  %v3704_v15 = vpop.xlane.xlu2 %747 }
 0x180   :  { %v1397_v48 = vrot.slane %v1396_v8, 1  ;;  %v2784_v43 = vpop.eup %2783  ;;  %v1810_v39 = vadd.f32 %v1809_v58, %v1808_v10  ;;  %v1157_v46 = vmul.f32 1.442695, %v1087_v3  ;;  %v2075_v47 = vpack.c.bf16 %v1803_v14, %v1803_v14 }
 0x181   :  { %v1551_v26 = vmul.f32 %v2784_v43, %v3576_v22  ;;  %v1552_v45 = vmul.f32 %v2784_v43, %v3584_v30  ;;  %v2009_v18 = vrot.slane %v2008_v6, 1  ;;  %v1386_v33 = vrot.slane %v1385_v29, 4  ;;  %v3679_v22 = vld [vmem:[%s4701_s1 + $0x80] sm:$0xff]  }
 0x182   :  { %v1398_v28 = vadd.f32 %v1397_v48, %v1396_v8  ;;  %v1159_v30 = vmul.f32 1.442695, %v1088_v21  ;;  %v1811_v51 = vrot.slane %v1810_v39, 1  ;;  %v1105_v19 = vsub.f32 %v3561_v49, %v947_v32 }
 0x183   :  { %1616 = vst.msk [vmem:[%s4707_s7 + $0xb0] sm:$0xff] %vm1593_vm1, %v1551_v26  ;;  %v1744_v23 = vmul.f32 %v1680_v37, %v1551_v26  ;;  %v1745_v27 = vmul.f32 %v1681_v20, %v1552_v45  ;;  %v1387_v60 = vadd.f32 %v1386_v33, %v1385_v29  ;;  %v886_v37 = vrot.slane %v885_v24, 4  ;;  %v3686_v42 = vpop.eup %2785 }
 0x184   :  { %2789 = vrcp.f32 %v1398_v28  ;;  %1617 = vst.msk [vmem:[%s4707_s7 + $0xb8] sm:$0xff] %vm1593_vm1, %v1552_v45  ;;  %v1106_v62 = vsub.f32 %v3574_v16, %v947_v32  ;;  %v2010_v35 = vadd.f32 %v2009_v18, %v2008_v6  ;;  %v1690_v63 = vunpack.c.l.bf16 %v3679_v22  ;;  %v3706_v6 = vpop.xlane.xlu0 %822  ;;  %v3731_v45 = vld [vmem:[%s4701_s1 + $0xc8] sm:$0xff]  }
 0x185   :  { %2791 = vpow2.f32 %v1157_v46  ;;  %v1885_v7 = vsel %vm267_vm0, %v1744_v23, 0.0  ;;  %v1886_v20 = vsel %vm267_vm0, %v1745_v27, 0.0  ;;  %v1388_v59 = vrot.slane %v1387_v60, 2  ;;  %v3694_v31 = vpop.eup %2787 }
 0x186   :  { %2793 = vpow2.f32 %v1159_v30  ;;  %v3691_v10 = vadd.f32 %v1886_v20, %v1885_v7  ;;  %v3697_v49 = vadd.f32 %v1924_v4, %v3567_v52  ;;  %v1691_v13 = vunpack.c.h.bf16 %v3679_v22  ;;  %v3744_v7 = vpop.xlane.xlu1 %744 }
 0x187   :  { %v1193_v14 = vmul.f32 1.442695, %v1105_v19  ;;  %v1195_v58 = vmul.f32 1.442695, %v1106_v62  ;;  %v3700_v53 = vperm.slane %v2075_v47, 0  ;;  %v1812_v12 = vadd.f32 %v1811_v51, %v1810_v39 }
 0x188   :  { %v1389_v16 = vadd.f32 %v1388_v59, %v1387_v60  ;;  %v1448_v55 = vadd.f32 %v3694_v31, %v3686_v42  ;;  %v887_v3 = vmax.f32 %v885_v24, %v886_v37  ;;  %v2098_v21 = vpack.c.bf16 %v2010_v35, %v2010_v35 }
 0x189   :  { %2795 = vpow2.f32 %v1193_v14  ;;  %v1039_v24 = vmax.f32 %v3706_v6, %v3624_v36  ;;  %v2076_v32 = vpack.c.bf16 %v1812_v12, %v1812_v12  ;;  %v1708_v60 = vunpack.c.l.bf16 %v3731_v45 }
 0x18a   :  { %v2790_v8 = vpop.eup %2789  ;;  %v1390_v43 = vrot.slane %v1389_v16, 1  ;;  %v1449_v28 = vrot.slane %v1448_v55, 4  ;;  %2797 = vpow2.f32 %v1195_v58  ;;  %v3740_v51 = vperm.slane %v2098_v21, 0  ;;  %v3754_v58 = vld [vmem:[%s4701_s1 + $0x1c] sm:$0xff]   ;;  %v3759_v21 = vpop.xlane.xlu2 %777 }
 0x18b   :  { %v3708_v48 = vpop.eup %2791  ;;  %v1563_v52 = vmul.f32 %v2790_v8, %v3606_v11  ;;  %v1564_v4 = vmul.f32 %v2790_v8, %v3616_v2  ;;  %v888_v2 = vrot.slane %v887_v3, 2  ;;  %v1040_v18 = vrot.slane %v1039_v24, 4 }
 0x18c   :  { %v3712_v39 = vpop.eup %2793  ;;  %v1391_v26 = vadd.f32 %v1390_v43, %v1389_v16  ;;  %4711 = vst [vmem:[#allocation5_spill] sm:$0xff] %v3740_v51  ;;  %v1709_v19 = vunpack.c.h.bf16 %v3731_v45  ;;  %v3748_v62 = vperm.slane %v2076_v32, 0  ;;  %v1888_v35 = vrot.slane %v3691_v10, 4 }
 0x18d   :  { %1628 = vst.msk [vmem:[%s4707_s7 + $0x110] sm:$0xff] %vm1593_vm1, %v1563_v52  ;;  %v1756_v29 = vmul.f32 %v1692_v1, %v1563_v52  ;;  %v1757_v11 = vmul.f32 %v1693_v38, %v1564_v4  ;;  %v1450_v1 = vadd.f32 %v1449_v28, %v1448_v55  ;;  %v1294_v9 = vadd.f32 %v3712_v39, %v3708_v48 }
 0x18e   :  { %1629 = vst.msk [vmem:[%s4707_s7 + $0x118] sm:$0xff] %vm1593_vm1, %v1564_v4  ;;  %v889_v47 = vmax.f32 %v887_v3, %v888_v2  ;;  %2799 = vrcp.f32 %v1391_v26  ;;  %v1041_v55 = vmax.f32 %v1039_v24, %v1040_v18  ;;  %v1664_v3 = vunpack.c.h.bf16 %v3572_v5 }
 0x18f   :  { %v1939_v38 = vsel %vm267_vm0, %v1756_v29, 0.0  ;;  %v1940_v46 = vsel %vm267_vm0, %v1757_v11, 0.0  ;;  %v1451_v27 = vrot.slane %v1450_v1, 2  ;;  %v3738_v30 = vpop.eup %2795  ;;  %v1295_v37 = vrot.slane %v1294_v9, 4 }
 0x190   :  { %v1941_v23 = vadd.f32 %v1940_v46, %v1939_v38  ;;  %v3746_v20 = vpop.eup %2797  ;;  %v890_v16 = vrot.slane %v889_v47, 1  ;;  %v948_v43 = vmax.f32 %v3744_v7, %v3704_v15  ;;  %v1665_v28 = vunpack.c.l.bf16 %v3754_v58 }
 0x191   :  { %v1452_v14 = vadd.f32 %v1451_v27, %v1450_v1  ;;  %v1296_v8 = vadd.f32 %v1295_v37, %v1294_v9  ;;  %v1357_v12 = vadd.f32 %v3746_v20, %v3738_v30  ;;  %v1889_v26 = vadd.f32 %v1888_v35, %v3691_v10 }
 0x192   :  { %v1942_v59 = vrot.slane %v1941_v23, 4  ;;  %v891_v2 = vmax.f32 %v889_v47, %v890_v16  ;;  %v1042_v24 = vrot.slane %v1041_v55, 2 }
 0x193   :  { %v1453_v4 = vrot.slane %v1452_v14, 1  ;;  %v1297_v29 = vrot.slane %v1296_v8, 2  ;;  %v1358_v11 = vrot.slane %v1357_v12, 4  ;;  %v1890_v35 = vrot.slane %v1889_v26, 2 }
 0x194   :  { %v1943_v52 = vadd.f32 %v1942_v59, %v1941_v23  ;;  %v2800_v32 = vpop.eup %2799  ;;  %v1089_v27 = vsub.f32 %v3649_v41, %v891_v2  ;;  %v1090_v37 = vsub.f32 %v3656_v17, %v891_v2  ;;  %v949_v59 = vrot.slane %v948_v43, 4 }
 0x195   :  { %v1454_v9 = vadd.f32 %v1453_v4, %v1452_v14  ;;  %v1561_v38 = vmul.f32 %v2800_v32, %v3651_v57  ;;  %v1562_v46 = vmul.f32 %v2800_v32, %v3658_v44  ;;  %v1298_v18 = vadd.f32 %v1297_v29, %v1296_v8 }
 0x196   :  { %v1944_v1 = vrot.slane %v1943_v52, 2  ;;  %v1359_v23 = vadd.f32 %v1358_v11, %v1357_v12  ;;  %v1161_v41 = vmul.f32 1.442695, %v1089_v27  ;;  %v1163_v17 = vmul.f32 1.442695, %v1090_v37  ;;  %v3787_v11 = vld [vmem:[%s4701_s1 + $0x60] sm:$0xff]   ;;  %v3795_v27 = vpop.xlane.xlu0 %699 }
 0x197   :  { %2801 = vrcp.f32 %v1454_v9  ;;  %1626 = vst.msk [vmem:[%s4707_s7 + $0x100] sm:$0xff] %vm1593_vm1, %v1561_v38  ;;  %v1754_v10 = vmul.f32 %v1690_v63, %v1561_v38  ;;  %v1755_v57 = vmul.f32 %v1691_v13, %v1562_v46  ;;  %v1299_v44 = vrot.slane %v1298_v18, 1 }
 0x198   :  { %v1360_v47 = vrot.slane %v1359_v23, 2  ;;  %1627 = vst.msk [vmem:[%s4707_s7 + $0x108] sm:$0xff] %vm1593_vm1, %v1562_v46  ;;  %v1043_v14 = vmax.f32 %v1041_v55, %v1042_v24  ;;  %v1945_v4 = vadd.f32 %v1944_v1, %v1943_v52  ;;  %2803 = vpow2.f32 %v1161_v41  ;;  %v3791_v52 = vpop.xlane.xlu2 %831 }
 0x199   :  { %v1930_v8 = vsel %vm267_vm0, %v1754_v10, 0.0  ;;  %v1931_v12 = vsel %vm267_vm0, %v1755_v57, 0.0  ;;  %v1300_v16 = vadd.f32 %v1299_v44, %v1298_v18  ;;  %v950_v55 = vmax.f32 %v948_v43, %v949_v59  ;;  %v3799_v59 = vpop.xlane.xlu1 %774 }
 0x19a   :  { %v1361_v63 = vadd.f32 %v1360_v47, %v1359_v23  ;;  %v1932_v22 = vadd.f32 %v1931_v12, %v1930_v8  ;;  %v1044_v13 = vrot.slane %v1043_v14, 1  ;;  %v3789_v9 = vadd.f32 %v1890_v35, %v1889_v26 }
 0x19b   :  { %2805 = vrcp.f32 %v1300_v16  ;;  %v951_v23 = vrot.slane %v950_v55, 2  ;;  %v1946_v37 = vrot.slane %v1945_v4, 1  ;;  %v1682_v43 = vunpack.c.l.bf16 %v3787_v11 }
 0x19c   :  { %v1362_v2 = vrot.slane %v1361_v63, 1  ;;  %v1933_v24 = vrot.slane %v1932_v22, 4  ;;  %2807 = vpow2.f32 %v1163_v17  ;;  %v1045_v38 = vmax.f32 %v1043_v14, %v1044_v13 }
 0x19d   :  { %v2802_v32 = vpop.eup %2801  ;;  %v1666_v35 = vunpack.c.h.bf16 %v3754_v58  ;;  %v952_v17 = vmax.f32 %v950_v55, %v951_v23 }
 0x19e   :  { %v1579_v1 = vmul.f32 %v2802_v32, %v3686_v42  ;;  %v1580_v46 = vmul.f32 %v2802_v32, %v3694_v31  ;;  %v1363_v18 = vadd.f32 %v1362_v2, %v1361_v63  ;;  %v1934_v10 = vadd.f32 %v1933_v24, %v1932_v22  ;;  %v3810_v44 = vpop.eup %2803  ;;  %v2577_v2 = vld [vmem:[%s4700_s0] sm:$0xff] }
 0x19f   :  { %v1133_v26 = vsub.f32 %v3706_v6, %v1045_v38  ;;  %v1134_v57 = vsub.f32 %v3624_v36, %v1045_v38  ;;  %v1683_v6 = vunpack.c.h.bf16 %v3787_v11  ;;  %v983_v36 = vmax.f32 %v3799_v59, %v3759_v21  ;;  %2253 = vrot.lane.b32.xlu1 %v2577_v2, %s2941_s30 }
 0x1a0   :  { %1644 = vst.msk [vmem:[%s4707_s7 + $0x190] sm:$0xff] %vm1593_vm1, %v1579_v1  ;;  %v1772_v42 = vmul.f32 %v1708_v60, %v1579_v1  ;;  %v1773_v31 = vmul.f32 %v1709_v19, %v1580_v46  ;;  %2809 = vrcp.f32 %v1363_v18  ;;  %v1935_v47 = vrot.slane %v1934_v10, 2  ;;  %v3847_v18 = vpop.xlane.xlu2 %696 }
 0x1a1   :  { %1645 = vst.msk [vmem:[%s4707_s7 + $0x198] sm:$0xff] %vm1593_vm1, %v1580_v46  ;;  %v1249_v41 = vmul.f32 1.442695, %v1133_v26  ;;  %v2806_v60 = vpop.eup %2805  ;;  %v1947_v22 = vadd.f32 %v1946_v37, %v1945_v4  ;;  %v1251_v11 = vmul.f32 1.442695, %v1134_v57  ;;  %v1892_v24 = vrot.slane %v3789_v9, 1 }
 0x1a2   :  { %v2011_v45 = vsel %vm267_vm0, %v1772_v42, 0.0  ;;  %v2012_v19 = vsel %vm267_vm0, %v1773_v31, 0.0  ;;  %v3822_v14 = vpop.eup %2807  ;;  %v1936_v8 = vadd.f32 %v1935_v47, %v1934_v10  ;;  %v1535_v16 = vmul.f32 %v2806_v60, %v3708_v48  ;;  %v3851_v42 = vpop.xlane.xlu0 %783 }
 0x1a3   :  { %v2013_v12 = vadd.f32 %v2012_v19, %v2011_v45  ;;  %v1536_v63 = vmul.f32 %v2806_v60, %v3712_v39  ;;  %v1301_v13 = vadd.f32 %v3822_v14, %v3810_v44  ;;  %2811 = vpow2.f32 %v1249_v41 }
 0x1a4   :  { %v1937_v55 = vrot.slane %v1936_v8, 1  ;;  %1600 = vst.msk [vmem:[%s4707_s7 + $0x30] sm:$0xff] %vm1593_vm1, %v1535_v16  ;;  %v1728_v48 = vmul.f32 %v1664_v3, %v1535_v16  ;;  %2813 = vpow2.f32 %v1251_v11  ;;  %v953_v1 = vrot.slane %v952_v17, 1 }
 0x1a5   :  { %v2014_v32 = vrot.slane %v2013_v12, 4  ;;  %v1729_v39 = vmul.f32 %v1665_v28, %v1536_v63  ;;  %1601 = vst.msk [vmem:[%s4707_s7 + $0x38] sm:$0xff] %vm1593_vm1, %v1536_v63  ;;  %v1302_v38 = vrot.slane %v1301_v13, 4  ;;  %v984_v28 = vrot.slane %v983_v36, 4 }
 0x1a6   :  { %v2810_v4 = vpop.eup %2809  ;;  %v1813_v5 = vsel %vm267_vm0, %v1728_v48, 0.0  ;;  %v2091_v31 = vpack.c.bf16 %v1947_v22, %v1947_v22  ;;  %v1938_v57 = vadd.f32 %v1937_v55, %v1936_v8  ;;  %v954_v41 = vmax.f32 %v952_v17, %v953_v1 }
 0x1a7   :  { %v2015_v46 = vadd.f32 %v2014_v32, %v2013_v12  ;;  %v1814_v3 = vsel %vm267_vm0, %v1729_v39, 0.0  ;;  %v1553_v37 = vmul.f32 %v2810_v4, %v3738_v30  ;;  %v1554_v10 = vmul.f32 %v2810_v4, %v3746_v20 }
 0x1a8   :  { %v1815_v23 = vadd.f32 %v1814_v3, %v1813_v5  ;;  %v1303_v26 = vadd.f32 %v1302_v38, %v1301_v13  ;;  %v1107_v20 = vsub.f32 %v3744_v7, %v954_v41  ;;  %v1108_v17 = vsub.f32 %v3704_v15, %v954_v41  ;;  %v3875_v13 = vld [vmem:[%s4701_s1 + $0x24] sm:$0xff]   ;;  %v3887_v5 = vld [vmem:[%s4701_s1 + $0xd0] sm:$0xff]  }
 0x1a9   :  { %v2016_v47 = vrot.slane %v2015_v46, 2  ;;  %v3853_v60 = vpop.eup %2811  ;;  %1618 = vst.msk [vmem:[%s4707_s7 + $0xc0] sm:$0xff] %vm1593_vm1, %v1553_v37  ;;  %v1746_v19 = vmul.f32 %v1682_v43, %v1553_v37  ;;  %v1747_v12 = vmul.f32 %v1683_v6, %v1554_v10  ;;  %v985_v8 = vmax.f32 %v983_v36, %v984_v28  ;;  %v3891_v28 = vpop.xlane.xlu1 %828 }
 0x1aa   :  { %v1816_v45 = vrot.slane %v1815_v23, 4  ;;  %v1304_v30 = vrot.slane %v1303_v26, 2  ;;  %1619 = vst.msk [vmem:[%s4707_s7 + $0xc8] sm:$0xff] %vm1593_vm1, %v1554_v10  ;;  %v3865_v63 = vpop.eup %2813  ;;  %v3868_v22 = vadd.f32 %v1892_v24, %v3789_v9  ;;  %v3877_v2 = vperm.slane %v2091_v31, 0 }
 0x1ab   :  { %v2017_v16 = vadd.f32 %v2016_v47, %v2015_v46  ;;  %v1894_v43 = vsel %vm267_vm0, %v1746_v19, 0.0  ;;  %v1895_v6 = vsel %vm267_vm0, %v1747_v12, 0.0  ;;  %v2090_v7 = vpack.c.bf16 %v1938_v57, %v1938_v57  ;;  %v3901_v57 = vld [vmem:[%s4701_s1 + $0x68] sm:$0xff]  }
 0x1ac   :  { %v1305_v11 = vadd.f32 %v1304_v30, %v1303_v26  ;;  %4712 = vst [vmem:[#allocation6_spill] sm:$0xff] %v3877_v2  ;;  %v1896_v15 = vadd.f32 %v1895_v6, %v1894_v43  ;;  %v1455_v36 = vadd.f32 %v3865_v63, %v3853_v60  ;;  %v1817_v55 = vadd.f32 %v1816_v45, %v1815_v23  ;;  %v3896_v26 = vpop.xlane.xlu2 %780  ;;  %v3903_v45 = vpop.xlane.xlu0 %837 }
 0x1ad   :  { %v1197_v32 = vmul.f32 1.442695, %v1107_v20  ;;  %v1199_v48 = vmul.f32 1.442695, %v1108_v17  ;;  %v2018_v39 = vrot.slane %v2017_v16, 1  ;;  %v1667_v4 = vunpack.c.l.bf16 %v3875_v13 }
 0x1ae   :  { %v1306_v9 = vrot.slane %v1305_v11, 1  ;;  %v1456_v24 = vrot.slane %v1455_v36, 4  ;;  %v986_v38 = vrot.slane %v985_v8, 2  ;;  %v892_v3 = vmax.f32 %v3847_v18, %v3795_v27 }
 0x1af   :  { %2815 = vpow2.f32 %v1197_v32  ;;  %v3894_v37 = vperm.slane %v2090_v7, 0  ;;  %v1818_v31 = vrot.slane %v1817_v55, 2  ;;  %v2019_v19 = vadd.f32 %v2018_v39, %v2017_v16 }
 0x1b0   :  { %v1307_v46 = vadd.f32 %v1306_v9, %v1305_v11  ;;  %v1457_v10 = vadd.f32 %v1456_v24, %v1455_v36  ;;  %2817 = vpow2.f32 %v1199_v48  ;;  %v987_v47 = vmax.f32 %v985_v8, %v986_v38 }
 0x1b1   :  { %4713 = vst [vmem:[#allocation7_spill] sm:$0xff] %v3894_v37  ;;  %v893_v41 = vrot.slane %v892_v3, 4  ;;  %v1710_v12 = vunpack.c.l.bf16 %v3887_v5  ;;  %v1046_v20 = vmax.f32 %v3891_v28, %v3791_v52  ;;  %v1711_v17 = vunpack.c.h.bf16 %v3887_v5 }
 0x1b2   :  { %2819 = vrcp.f32 %v1307_v46  ;;  %v1458_v30 = vrot.slane %v1457_v10, 2  ;;  %v988_v43 = vrot.slane %v987_v47, 1  ;;  %v990_v11 = vmax.f32 %v3896_v26, %v3851_v42 }
 0x1b3   :  { %v894_v6 = vmax.f32 %v892_v3, %v893_v41  ;;  %v1684_v8 = vunpack.c.l.bf16 %v3901_v57  ;;  %v1685_v36 = vunpack.c.h.bf16 %v3901_v57  ;;  %v1047_v9 = vrot.slane %v1046_v20, 4 }
 0x1b4   :  { %v1459_v7 = vadd.f32 %v1458_v30, %v1457_v10  ;;  %v1819_v48 = vadd.f32 %v1818_v31, %v1817_v55  ;;  %v1897_v39 = vrot.slane %v1896_v15, 4  ;;  %v989_v24 = vmax.f32 %v987_v47, %v988_v43 }
 0x1b5   :  { %v3913_v16 = vpop.eup %2815  ;;  %v2099_v46 = vpack.c.bf16 %v2019_v19, %v2019_v19  ;;  %v895_v41 = vrot.slane %v894_v6, 2  ;;  %v1048_v23 = vmax.f32 %v1046_v20, %v1047_v9  ;;  %v991_v29 = vrot.slane %v990_v11, 4  ;;  %v3942_v9 = vpop.xlane.xlu1 %705 }
 0x1b6   :  { %v3916_v38 = vpop.eup %2817  ;;  %v1460_v3 = vrot.slane %v1459_v7, 1  ;;  %v1117_v30 = vsub.f32 %v3799_v59, %v989_v24  ;;  %v1118_v25 = vsub.f32 %v3759_v21, %v989_v24  ;;  %v3924_v20 = vadd.f32 %v1897_v39, %v1896_v15 }
 0x1b7   :  { %v1364_v10 = vadd.f32 %v3916_v38, %v3913_v16  ;;  %v896_v47 = vmax.f32 %v894_v6, %v895_v41  ;;  %v992_v33 = vmax.f32 %v990_v11, %v991_v29  ;;  %v3936_v29 = vpop.xlane.xlu2 %834 }
 0x1b8   :  { %v2820_v50 = vpop.eup %2819  ;;  %v1461_v31 = vadd.f32 %v1460_v3, %v1459_v7  ;;  %v1217_v19 = vmul.f32 1.442695, %v1117_v30  ;;  %v1219_v1 = vmul.f32 1.442695, %v1118_v25  ;;  %v1053_v24 = vmax.f32 %v3936_v29, %v3903_v45 }
 0x1b9   :  { %v1537_v32 = vmul.f32 %v2820_v50, %v3810_v44  ;;  %v1538_v55 = vmul.f32 %v2820_v50, %v3822_v14  ;;  %v1365_v43 = vrot.slane %v1364_v10, 4  ;;  %v1820_v44 = vrot.slane %v1819_v48, 1  ;;  %v3938_v14 = vpop.xlane.xlu0 %702 }
 0x1ba   :  { %2821 = vrcp.f32 %v1461_v31  ;;  %v897_v50 = vrot.slane %v896_v47, 1  ;;  %v993_v7 = vrot.slane %v992_v33, 2  ;;  %v899_v3 = vmax.f32 %v3938_v14, %v3942_v9 }
 0x1bb   :  { %1602 = vst.msk [vmem:[%s4707_s7 + $0x40] sm:$0xff] %vm1593_vm1, %v1537_v32  ;;  %v1730_v21 = vmul.f32 %v1666_v35, %v1537_v32  ;;  %v1731_v59 = vmul.f32 %v1667_v4, %v1538_v55  ;;  %v1366_v25 = vadd.f32 %v1365_v43, %v1364_v10  ;;  %2823 = vpow2.f32 %v1217_v19 }
 0x1bc   :  { %1603 = vst.msk [vmem:[%s4707_s7 + $0x48] sm:$0xff] %vm1593_vm1, %v1538_v55  ;;  %2825 = vpow2.f32 %v1219_v1  ;;  %v1049_v35 = vrot.slane %v1048_v23, 2  ;;  %v898_v11 = vmax.f32 %v896_v47, %v897_v50  ;;  %v3944_v32 = vperm.slane %v2099_v46, 0 }
 0x1bd   :  { %v1822_v15 = vsel %vm267_vm0, %v1730_v21, 0.0  ;;  %v1823_v58 = vsel %vm267_vm0, %v1731_v59, 0.0  ;;  %v1367_v6 = vrot.slane %v1366_v25, 2  ;;  %v1899_v41 = vrot.slane %v3924_v20, 2 }
 0x1be   :  { %v1824_v4 = vadd.f32 %v1823_v58, %v1822_v15  ;;  %4714 = vst [vmem:[#allocation8_spill] sm:$0xff] %v3944_v32  ;;  %v1050_v39 = vmax.f32 %v1048_v23, %v1049_v35  ;;  %v1091_v1 = vsub.f32 %v3847_v18, %v898_v11  ;;  %v1092_v30 = vsub.f32 %v3795_v27, %v898_v11 }
 0x1bf   :  { %v1368_v10 = vadd.f32 %v1367_v6, %v1366_v25  ;;  %v3953_v31 = vadd.f32 %v1820_v44, %v1819_v48  ;;  %v994_v43 = vmax.f32 %v992_v33, %v993_v7  ;;  %v1054_v50 = vrot.slane %v1053_v24, 4 }
 0x1c0   :  { %v2822_v55 = vpop.eup %2821  ;;  %v1825_v47 = vrot.slane %v1824_v4, 4  ;;  %v1051_v46 = vrot.slane %v1050_v39, 1  ;;  %v1165_v25 = vmul.f32 1.442695, %v1091_v1  ;;  %v1167_v18 = vmul.f32 1.442695, %v1092_v30 }
 0x1c1   :  { %v3955_v23 = vpop.eup %2823  ;;  %v1581_v19 = vmul.f32 %v2822_v55, %v3853_v60  ;;  %v1582_v21 = vmul.f32 %v2822_v55, %v3865_v63  ;;  %v1369_v59 = vrot.slane %v1368_v10, 1  ;;  %v900_v27 = vrot.slane %v899_v3, 4 }
 0x1c2   :  { %v3959_v15 = vpop.eup %2825  ;;  %v1052_v58 = vmax.f32 %v1050_v39, %v1051_v46  ;;  %v995_v48 = vrot.slane %v994_v43, 1  ;;  %2827 = vpow2.f32 %v1165_v25  ;;  %v1055_v55 = vmax.f32 %v1053_v24, %v1054_v50 }
 0x1c3   :  { %1646 = vst.msk [vmem:[%s4707_s7 + $0x1a0] sm:$0xff] %vm1593_vm1, %v1581_v19  ;;  %v1774_v33 = vmul.f32 %v1710_v12, %v1581_v19  ;;  %v1775_v60 = vmul.f32 %v1711_v17, %v1582_v21  ;;  %v1370_v63 = vadd.f32 %v1369_v59, %v1368_v10  ;;  %v1399_v44 = vadd.f32 %v3959_v15, %v3955_v23 }
 0x1c4   :  { %1647 = vst.msk [vmem:[%s4707_s7 + $0x1a8] sm:$0xff] %vm1593_vm1, %v1582_v21  ;;  %v1135_v35 = vsub.f32 %v3891_v28, %v1052_v58  ;;  %v1136_v6 = vsub.f32 %v3791_v52, %v1052_v58  ;;  %v1826_v10 = vadd.f32 %v1825_v47, %v1824_v4  ;;  %v996_v30 = vmax.f32 %v994_v43, %v995_v48  ;;  %v3983_v52 = vld [vmem:[%s4701_s1 + $0x90] sm:$0xff]   ;;  %v3985_v21 = vpop.xlane.xlu0 %786  ;;  %v3996_v58 = vpop.xlane.xlu1 %789 }
 0x1c5   :  { %v2020_v5 = vsel %vm267_vm0, %v1774_v33, 0.0  ;;  %v2021_v17 = vsel %vm267_vm0, %v1775_v60, 0.0  ;;  %2829 = vrcp.f32 %v1370_v63  ;;  %v1400_v7 = vrot.slane %v1399_v44, 4 }
 0x1c6   :  { %v2022_v11 = vadd.f32 %v2021_v17, %v2020_v5  ;;  %2831 = vpow2.f32 %v1167_v18  ;;  %v1253_v39 = vmul.f32 1.442695, %v1135_v35  ;;  %v1255_v1 = vmul.f32 1.442695, %v1136_v6 }
 0x1c7   :  { %v1401_v28 = vadd.f32 %v1400_v7, %v1399_v44  ;;  %v901_v19 = vmax.f32 %v899_v3, %v900_v27  ;;  %v1119_v59 = vsub.f32 %v3896_v26, %v996_v30  ;;  %v1120_v25 = vsub.f32 %v3851_v42, %v996_v30 }
 0x1c8   :  { %v2023_v46 = vrot.slane %v2022_v11, 4  ;;  %2833 = vpow2.f32 %v1253_v39  ;;  %v1056_v4 = vrot.slane %v1055_v55, 2  ;;  %v3989_v47 = vpop.eup %2827  ;;  %v3994_v43 = vadd.f32 %v1899_v41, %v3924_v20 }
 0x1c9   :  { %2835 = vpow2.f32 %v1255_v1  ;;  %v1402_v18 = vrot.slane %v1401_v28, 2  ;;  %v1694_v27 = vunpack.c.l.bf16 %v3983_v52  ;;  %v1695_v26 = vunpack.c.h.bf16 %v3983_v52 }
 0x1ca   :  { %v2024_v50 = vadd.f32 %v2023_v46, %v2022_v11  ;;  %v902_v33 = vrot.slane %v901_v19, 2  ;;  %v997_v42 = vmax.f32 %v3985_v21, %v3996_v58  ;;  %v1827_v63 = vrot.slane %v1826_v10, 2 }
 0x1cb   :  { %v2830_v3 = vpop.eup %2829  ;;  %v1403_v41 = vadd.f32 %v1402_v18, %v1401_v28  ;;  %v1221_v35 = vmul.f32 1.442695, %v1119_v59  ;;  %v1223_v6 = vmul.f32 1.442695, %v1120_v25  ;;  %v1057_v5 = vmax.f32 %v1055_v55, %v1056_v4  ;;  %v4030_v4 = vpop.xlane.xlu2 %711 }
 0x1cc   :  { %v4002_v60 = vpop.eup %2831  ;;  %v1555_v48 = vmul.f32 %v2830_v3, %v3913_v16  ;;  %v1556_v20 = vmul.f32 %v2830_v3, %v3916_v38  ;;  %v2025_v11 = vrot.slane %v2024_v50, 2  ;;  %v903_v55 = vmax.f32 %v901_v19, %v902_v33  ;;  %v4037_v19 = vld [vmem:[%s4701_s1 + $0x2c] sm:$0xff]   ;;  %v4065_v61 = vpop.xlane.xlu0 %840 }
 0x1cd   :  { %v1308_v44 = vadd.f32 %v4002_v60, %v3989_v47  ;;  %v1404_v7 = vrot.slane %v1403_v41, 1  ;;  %2837 = vpow2.f32 %v1221_v35  ;;  %v1058_v30 = vrot.slane %v1057_v5, 1 }
 0x1ce   :  { %v4008_v17 = vpop.eup %2833  ;;  %1620 = vst.msk [vmem:[%s4707_s7 + $0xd0] sm:$0xff] %vm1593_vm1, %v1555_v48  ;;  %v1748_v16 = vmul.f32 %v1684_v8, %v1555_v48  ;;  %v1749_v38 = vmul.f32 %v1685_v36, %v1556_v20  ;;  %v998_v59 = vrot.slane %v997_v42, 4  ;;  %2839 = vpow2.f32 %v1223_v6 }
 0x1cf   :  { %v4018_v39 = vpop.eup %2835  ;;  %1621 = vst.msk [vmem:[%s4707_s7 + $0xd8] sm:$0xff] %vm1593_vm1, %v1556_v20  ;;  %v1309_v1 = vrot.slane %v1308_v44, 4  ;;  %v1405_v8 = vadd.f32 %v1404_v7, %v1403_v41  ;;  %v4032_v18 = vadd.f32 %v1827_v63, %v1826_v10  ;;  %v1059_v3 = vmax.f32 %v1057_v5, %v1058_v30 }
 0x1d0   :  { %v1903_v46 = vsel %vm267_vm0, %v1748_v16, 0.0  ;;  %v1904_v28 = vsel %vm267_vm0, %v1749_v38, 0.0  ;;  %v1462_v25 = vadd.f32 %v4018_v39, %v4008_v17  ;;  %v904_v33 = vrot.slane %v903_v55, 1 }
 0x1d1   :  { %v4026_v57 = vadd.f32 %v1904_v28, %v1903_v46  ;;  %v1310_v36 = vadd.f32 %v1309_v1, %v1308_v44  ;;  %2841 = vrcp.f32 %v1405_v8  ;;  %v2026_v20 = vadd.f32 %v2025_v11, %v2024_v50  ;;  %v4043_v44 = vld [vmem:[%s4701_s1 + $0xd8] sm:$0xff]  }
 0x1d2   :  { %v1463_v35 = vrot.slane %v1462_v25, 4  ;;  %v1137_v10 = vsub.f32 %v3936_v29, %v1059_v3  ;;  %v1138_v63 = vsub.f32 %v3903_v45, %v1059_v3  ;;  %v905_v6 = vmax.f32 %v903_v55, %v904_v33  ;;  %v4059_v33 = vpop.xlane.xlu1 %843 }
 0x1d3   :  { %v1311_v41 = vrot.slane %v1310_v36, 2  ;;  %v999_v16 = vmax.f32 %v997_v42, %v998_v59  ;;  %v4047_v38 = vpop.eup %2837  ;;  %v1668_v5 = vunpack.c.h.bf16 %v3875_v13  ;;  %v1669_v7 = vunpack.c.l.bf16 %v4037_v19 }
 0x1d4   :  { %v1464_v11 = vadd.f32 %v1463_v35, %v1462_v25  ;;  %v1712_v30 = vunpack.c.l.bf16 %v4043_v44  ;;  %v1713_v46 = vunpack.c.h.bf16 %v4043_v44  ;;  %v1257_v28 = vmul.f32 1.442695, %v1137_v10  ;;  %v4054_v29 = vpop.eup %2839 }
 0x1d5   :  { %v1312_v50 = vadd.f32 %v1311_v41, %v1310_v36  ;;  %v2027_v45 = vrot.slane %v2026_v20, 1  ;;  %v1259_v8 = vmul.f32 1.442695, %v1138_v63  ;;  %v1406_v3 = vadd.f32 %v4054_v29, %v4047_v38 }
 0x1d6   :  { %v1465_v42 = vrot.slane %v1464_v11, 2  ;;  %2843 = vpow2.f32 %v1257_v28  ;;  %v1093_v36 = vsub.f32 %v3938_v14, %v905_v6  ;;  %v1000_v25 = vrot.slane %v999_v16, 2 }
 0x1d7   :  { %v1313_v55 = vrot.slane %v1312_v50, 1  ;;  %v2842_v59 = vpop.eup %2841  ;;  %v1906_v41 = vrot.slane %v4026_v57, 4  ;;  %v1407_v0 = vrot.slane %v1406_v3, 4  ;;  %2845 = vpow2.f32 %v1259_v8 }
 0x1d8   :  { %v1565_v35 = vmul.f32 %v2842_v59, %v3955_v23  ;;  %v1566_v10 = vmul.f32 %v2842_v59, %v3959_v15  ;;  %v1466_v24 = vadd.f32 %v1465_v42, %v1464_v11  ;;  %v1094_v63 = vsub.f32 %v3942_v9, %v905_v6 }
 0x1d9   :  { %v1314_v12 = vadd.f32 %v1313_v55, %v1312_v50  ;;  %v1169_v15 = vmul.f32 1.442695, %v1093_v36  ;;  %v4075_v50 = vpop.xlane.xlu2 %795  ;;  %v1408_v6 = vadd.f32 %v1407_v0, %v1406_v3  ;;  %v1001_v28 = vmax.f32 %v999_v16, %v1000_v25 }
 0x1da   :  { %1630 = vst.msk [vmem:[%s4707_s7 + $0x120] sm:$0xff] %vm1593_vm1, %v1565_v35  ;;  %v1758_v14 = vmul.f32 %v1694_v27, %v1565_v35  ;;  %v1759_v23 = vmul.f32 %v1695_v26, %v1566_v10  ;;  %v1467_v9 = vrot.slane %v1466_v24, 1  ;;  %v1171_v11 = vmul.f32 1.442695, %v1094_v63 }
 0x1db   :  { %2847 = vrcp.f32 %v1314_v12  ;;  %1631 = vst.msk [vmem:[%s4707_s7 + $0x128] sm:$0xff] %vm1593_vm1, %v1566_v10  ;;  %v4086_v12 = vld [vmem:[%s4701_s1 + $0x98] sm:$0xff]   ;;  %v1060_v52 = vmax.f32 %v4065_v61, %v4059_v33  ;;  %v1409_v0 = vrot.slane %v1408_v6, 2  ;;  %v2028_v16 = vadd.f32 %v2027_v45, %v2026_v20 }
 0x1dc   :  { %v1948_v55 = vsel %vm267_vm0, %v1758_v14, 0.0  ;;  %v1949_v27 = vsel %vm267_vm0, %v1759_v23, 0.0  ;;  %2849 = vpow2.f32 %v1169_v15  ;;  %v4090_v26 = vpop.eup %2843  ;;  %v1468_v8 = vadd.f32 %v1467_v9, %v1466_v24 }
 0x1dd   :  { %v1950_v42 = vadd.f32 %v1949_v27, %v1948_v55  ;;  %2851 = vpow2.f32 %v1171_v11  ;;  %v1907_v59 = vadd.f32 %v1906_v41, %v4026_v57  ;;  %v1002_v3 = vrot.slane %v1001_v28, 1  ;;  %v4093_v25 = vpop.eup %2845  ;;  %v4101_v11 = vpop.xlane.xlu1 %708 }
 0x1de   :  { %v1061_v36 = vrot.slane %v1060_v52, 4  ;;  %2853 = vrcp.f32 %v1468_v8  ;;  %v1696_v10 = vunpack.c.l.bf16 %v4086_v12  ;;  %v1410_v63 = vadd.f32 %v1409_v0, %v1408_v6 }
 0x1df   :  { %v1951_v35 = vrot.slane %v1950_v42, 4  ;;  %v1469_v24 = vadd.f32 %v4093_v25, %v4090_v26  ;;  %v1003_v15 = vmax.f32 %v1001_v28, %v1002_v3  ;;  %v2100_v27 = vpack.c.bf16 %v2028_v16, %v2028_v16 }
 0x1e0   :  { %v1062_v9 = vmax.f32 %v1060_v52, %v1061_v36  ;;  %v1411_v41 = vrot.slane %v1410_v63, 1  ;;  %v1908_v6 = vrot.slane %v1907_v59, 2 }
 0x1e1   :  { %v2848_v14 = vpop.eup %2847  ;;  %v1952_v20 = vadd.f32 %v1951_v35, %v1950_v42  ;;  %v1470_v8 = vrot.slane %v1469_v24, 4  ;;  %v1121_v0 = vsub.f32 %v3985_v21, %v1003_v15  ;;  %v1122_v52 = vsub.f32 %v3996_v58, %v1003_v15  ;;  %v4124_v21 = vld [vmem:[%s4701_s1 + $0xe0] sm:$0xff]   ;;  %v2578_v58 = vld [vmem:[%s4700_s0 + $0x8] sm:$0xff] }
 0x1e2   :  { %v1539_v57 = vmul.f32 %v2848_v14, %v3989_v47  ;;  %v1540_v45 = vmul.f32 %v2848_v14, %v4002_v60  ;;  %v4103_v55 = vpop.eup %2849  ;;  %v1412_v28 = vadd.f32 %v1411_v41, %v1410_v63  ;;  %2255 = vrot.lane.b32.xlu2 %v2578_v58, %s2941_s30  ;;  %v1714_v41 = vunpack.c.l.bf16 %v4124_v21  ;;  %s2331_s30 = sshll.u32 %s2942_s24, 4  ;;  %s2332_s30 = int_to_ptr.vmem [resolvable:$true] %s2331_s30 }
 0x1e3   :  { %v4106_v48 = vpop.eup %2851  ;;  %v1953_v42 = vrot.slane %v1952_v20, 2  ;;  %v1471_v16 = vadd.f32 %v1470_v8, %v1469_v24  ;;  %v1225_v63 = vmul.f32 1.442695, %v1121_v0  ;;  %v1227_v1 = vmul.f32 1.442695, %v1122_v52 }
 0x1e4   :  { %1604 = vst.msk [vmem:[%s4707_s7 + $0x50] sm:$0xff] %vm1593_vm1, %v1539_v57  ;;  %v1732_v47 = vmul.f32 %v1668_v5, %v1539_v57  ;;  %v1733_v60 = vmul.f32 %v1669_v7, %v1540_v45  ;;  %v1315_v13 = vadd.f32 %v4106_v48, %v4103_v55  ;;  %v1063_v5 = vrot.slane %v1062_v9, 2  ;;  %v4128_v7 = vpop.xlane.xlu2 %714  ;;  %v2854_v3 = vpop.eup %2853 }
 0x1e5   :  { %1605 = vst.msk [vmem:[%s4707_s7 + $0x58] sm:$0xff] %vm1593_vm1, %v1540_v45  ;;  %2855 = vrcp.f32 %v1412_v28  ;;  %v1583_v24 = vmul.f32 %v2854_v3, %v4008_v17  ;;  %v1584_v15 = vmul.f32 %v2854_v3, %v4018_v39  ;;  %v1472_v57 = vrot.slane %v1471_v16, 2  ;;  %v4158_v58 = vpop.xlane.xlu1 %792 }
 0x1e6   :  { %v1831_v36 = vsel %vm267_vm0, %v1732_v47, 0.0  ;;  %v1832_v35 = vsel %vm267_vm0, %v1733_v60, 0.0  ;;  %v4138_v45 = vperm.slane %v2100_v27, 0  ;;  %v1316_v8 = vrot.slane %v1315_v13, 4 }
 0x1e7   :  { %v1833_v14 = vadd.f32 %v1832_v35, %v1831_v36  ;;  %v1954_v23 = vadd.f32 %v1953_v42, %v1952_v20  ;;  %1648 = vst.msk [vmem:[%s4707_s7 + $0x1b0] sm:$0xff] %vm1593_vm1, %v1583_v24  ;;  %v1776_v17 = vmul.f32 %v1712_v30, %v1583_v24  ;;  %v1777_v39 = vmul.f32 %v1713_v46, %v1584_v15 }
 0x1e8   :  { %v1473_v0 = vadd.f32 %v1472_v57, %v1471_v16  ;;  %1649 = vst.msk [vmem:[%s4707_s7 + $0x1b8] sm:$0xff] %vm1593_vm1, %v1584_v15  ;;  %v1715_v27 = vunpack.c.h.bf16 %v4124_v21  ;;  %v1317_v20 = vadd.f32 %v1316_v8, %v1315_v13  ;;  %2857 = vpow2.f32 %v1225_v63 }
 0x1e9   :  { %v1064_v47 = vmax.f32 %v1062_v9, %v1063_v5  ;;  %v4154_v60 = vadd.f32 %v1908_v6, %v1907_v59  ;;  %v2029_v28 = vsel %vm267_vm0, %v1776_v17, 0.0  ;;  %v2030_v30 = vsel %vm267_vm0, %v1777_v39, 0.0  ;;  %v4165_v6 = vld [vmem:[%s4701_s1 + $0x34] sm:$0xff]  }
 0x1ea   :  { %v1474_v52 = vrot.slane %v1473_v0, 1  ;;  %v1834_v46 = vrot.slane %v1833_v14, 4  ;;  %v2031_v42 = vadd.f32 %v2030_v30, %v2029_v28  ;;  %v1318_v16 = vrot.slane %v1317_v20, 2 }
 0x1eb   :  { %v2856_v44 = vpop.eup %2855  ;;  %2859 = vpow2.f32 %v1227_v1  ;;  %v1955_v3 = vrot.slane %v1954_v23, 1  ;;  %v1065_v35 = vrot.slane %v1064_v47, 1  ;;  %v906_v63 = vmax.f32 %v4101_v11, %v4030_v4 }
 0x1ec   :  { %v1567_v36 = vmul.f32 %v2856_v44, %v4047_v38  ;;  %v1568_v13 = vmul.f32 %v2856_v44, %v4054_v29  ;;  %v1475_v9 = vadd.f32 %v1474_v52, %v1473_v0  ;;  %v2032_v59 = vrot.slane %v2031_v42, 4  ;;  %v4179_v15 = vpop.xlane.xlu2 %717 }
 0x1ed   :  { %v1319_v5 = vadd.f32 %v1318_v16, %v1317_v20  ;;  %v4715_v1 = vunpack.c.h.bf16 %v4086_v12  ;;  %v1004_v24 = vmax.f32 %v4158_v58, %v4075_v50  ;;  %v1835_v8 = vadd.f32 %v1834_v46, %v1833_v14  ;;  %v4199_v16 = vld [vmem:[%s4701_s1 + $0xa0] sm:$0xff]  }
 0x1ee   :  { %1632 = vst.msk [vmem:[%s4707_s7 + $0x130] sm:$0xff] %vm1593_vm1, %v1567_v36  ;;  %v1760_v38 = vmul.f32 %v1696_v10, %v1567_v36  ;;  %2861 = vrcp.f32 %v1475_v9  ;;  %v4181_v57 = vpop.eup %2857  ;;  %v1670_v17 = vunpack.c.h.bf16 %v4037_v19  ;;  %v1066_v39 = vmax.f32 %v1064_v47, %v1065_v35 }
 0x1ef   :  { %v1761_v29 = vmul.f32 %v4715_v1, %v1568_v13  ;;  %1633 = vst.msk [vmem:[%s4707_s7 + $0x138] sm:$0xff] %vm1593_vm1, %v1568_v13  ;;  %v1320_v10 = vrot.slane %v1319_v5, 1  ;;  %v4188_v12 = vadd.f32 %v1955_v3, %v1954_v23  ;;  %v1671_v28 = vunpack.c.l.bf16 %v4165_v6 }
 0x1f0   :  { %v1957_v0 = vsel %vm267_vm0, %v1760_v38, 0.0  ;;  %v2033_v14 = vadd.f32 %v2032_v59, %v2031_v42  ;;  %v1139_v46 = vsub.f32 %v4065_v61, %v1066_v39  ;;  %v1140_v47 = vsub.f32 %v4059_v33, %v1066_v39 }
 0x1f1   :  { %v1958_v20 = vsel %vm267_vm0, %v1761_v29, 0.0  ;;  %v4193_v30 = vpop.eup %2859  ;;  %v1321_v44 = vadd.f32 %v1320_v10, %v1319_v5  ;;  %v907_v3 = vrot.slane %v906_v63, 4  ;;  %v1005_v36 = vrot.slane %v1004_v24, 4 }
 0x1f2   :  { %v1959_v52 = vadd.f32 %v1958_v20, %v1957_v0  ;;  %v1413_v23 = vadd.f32 %v4193_v30, %v4181_v57  ;;  %v1836_v13 = vrot.slane %v1835_v8, 2  ;;  %v1261_v42 = vmul.f32 1.442695, %v1139_v46 }
 0x1f3   :  { %2863 = vrcp.f32 %v1321_v44  ;;  %v1263_v35 = vmul.f32 1.442695, %v1140_v47  ;;  %v908_v61 = vmax.f32 %v906_v63, %v907_v3  ;;  %v1006_v38 = vmax.f32 %v1004_v24, %v1005_v36  ;;  %v4213_v44 = vld [vmem:[%s4701_s1 + $0xe8] sm:$0xff]  }
 0x1f4   :  { %v1960_v9 = vrot.slane %v1959_v52, 4  ;;  %v2862_v59 = vpop.eup %2861  ;;  %v1414_v5 = vrot.slane %v1413_v23, 4  ;;  %v2034_v1 = vrot.slane %v2033_v14, 2  ;;  %v1698_v0 = vunpack.c.l.bf16 %v4199_v16  ;;  %v4231_v47 = vpop.xlane.xlu2 %798 }
 0x1f5   :  { %v1585_v29 = vmul.f32 %v2862_v59, %v4090_v26  ;;  %v1586_v10 = vmul.f32 %v2862_v59, %v4093_v25  ;;  %2865 = vpow2.f32 %v1261_v42  ;;  %v4215_v63 = vadd.f32 %v1836_v13, %v1835_v8  ;;  %v4238_v13 = vpop.xlane.xlu1 %846 }
 0x1f6   :  { %v1415_v20 = vadd.f32 %v1414_v5, %v1413_v23  ;;  %v1961_v24 = vadd.f32 %v1960_v9, %v1959_v52  ;;  %2867 = vpow2.f32 %v1263_v35  ;;  %v909_v8 = vrot.slane %v908_v61, 2  ;;  %v4229_v52 = vpop.xlane.xlu0 %804 }
 0x1f7   :  { %1650 = vst.msk [vmem:[%s4707_s7 + $0x1c0] sm:$0xff] %vm1593_vm1, %v1585_v29  ;;  %v1778_v26 = vmul.f32 %v1714_v41, %v1585_v29  ;;  %v1779_v25 = vmul.f32 %v1715_v27, %v1586_v10  ;;  %v1007_v23 = vrot.slane %v1006_v38, 2  ;;  %v4233_v36 = vadd.f32 %v2034_v1, %v2033_v14 }
 0x1f8   :  { %1651 = vst.msk [vmem:[%s4707_s7 + $0x1c8] sm:$0xff] %vm1593_vm1, %v1586_v10  ;;  %v1416_v46 = vrot.slane %v1415_v20, 2  ;;  %v1962_v35 = vrot.slane %v1961_v24, 2  ;;  %v910_v29 = vmax.f32 %v908_v61, %v909_v8  ;;  %v913_v14 = vmax.f32 %v4128_v7, %v4179_v15 }
 0x1f9   :  { %v2864_v3 = vpop.eup %2863  ;;  %v2038_v41 = vsel %vm267_vm0, %v1778_v26, 0.0  ;;  %v2039_v21 = vsel %vm267_vm0, %v1779_v25, 0.0  ;;  %v1008_v10 = vmax.f32 %v1006_v38, %v1007_v23  ;;  %v2036_v23 = vrot.slane %v4233_v36, 1 }
 0x1fa   :  { %v2040_v9 = vadd.f32 %v2039_v21, %v2038_v41  ;;  %v1541_v42 = vmul.f32 %v2864_v3, %v4103_v55  ;;  %v1542_v59 = vmul.f32 %v2864_v3, %v4106_v48  ;;  %v1417_v5 = vadd.f32 %v1416_v46, %v1415_v20 }
 0x1fb   :  { %v4244_v1 = vpop.eup %2865  ;;  %v911_v38 = vrot.slane %v910_v29, 1  ;;  %v1009_v20 = vrot.slane %v1008_v10, 1  ;;  %v914_v46 = vrot.slane %v913_v14, 4 }
 0x1fc   :  { %v2041_v26 = vrot.slane %v2040_v9, 4  ;;  %1606 = vst.msk [vmem:[%s4707_s7 + $0x60] sm:$0xff] %vm1593_vm1, %v1541_v42  ;;  %v1734_v55 = vmul.f32 %v1670_v17, %v1541_v42  ;;  %v1735_v25 = vmul.f32 %v1671_v28, %v1542_v59  ;;  %v1418_v48 = vrot.slane %v1417_v5, 1  ;;  %v4257_v8 = vpop.eup %2867  ;;  %v4267_v42 = vld [vmem:[%s4701_s1 + $0x3c] sm:$0xff]  }
 0x1fd   :  { %1607 = vst.msk [vmem:[%s4707_s7 + $0x68] sm:$0xff] %vm1593_vm1, %v1542_v59  ;;  %v1963_v28 = vadd.f32 %v1962_v35, %v1961_v24  ;;  %v1476_v21 = vadd.f32 %v4257_v8, %v4244_v1  ;;  %v912_v59 = vmax.f32 %v910_v29, %v911_v38  ;;  %v1010_v61 = vmax.f32 %v1008_v10, %v1009_v20  ;;  %v4279_v38 = vpop.xlane.xlu1 %807 }
 0x1fe   :  { %v1840_v3 = vsel %vm267_vm0, %v1734_v55, 0.0  ;;  %v1841_v19 = vsel %vm267_vm0, %v1735_v25, 0.0  ;;  %v1419_v17 = vadd.f32 %v1418_v48, %v1417_v5  ;;  %v2042_v33 = vadd.f32 %v2041_v26, %v2040_v9  ;;  %v4277_v9 = vpop.xlane.xlu2 %849 }
 0x1ff   :  { %v1842_v41 = vadd.f32 %v1841_v19, %v1840_v3  ;;  %v915_v27 = vmax.f32 %v913_v14, %v914_v46  ;;  %v1477_v39 = vrot.slane %v1476_v21, 4  ;;  %v1095_v5 = vsub.f32 %v4101_v11, %v912_v59  ;;  %v4275_v19 = vpop.xlane.xlu0 %801 }
 0x200   :  { %2869 = vrcp.f32 %v1419_v17  ;;  %v1096_v24 = vsub.f32 %v4030_v4, %v912_v59  ;;  %v1123_v25 = vsub.f32 %v4158_v58, %v1010_v61  ;;  %v1124_v48 = vsub.f32 %v4075_v50, %v1010_v61 }
 0x201   :  { %v916_v3 = vrot.slane %v915_v27, 2  ;;  %v1964_v29 = vrot.slane %v1963_v28, 1  ;;  %v1478_v10 = vadd.f32 %v1477_v39, %v1476_v21  ;;  %v1173_v14 = vmul.f32 1.442695, %v1095_v5 }
 0x202   :  { %v1175_v26 = vmul.f32 1.442695, %v1096_v24  ;;  %v2043_v11 = vrot.slane %v2042_v33, 2  ;;  %v1229_v20 = vmul.f32 1.442695, %v1123_v25  ;;  %v1843_v17 = vrot.slane %v1842_v41, 4 }
 0x203   :  { %v1231_v4 = vmul.f32 1.442695, %v1124_v48  ;;  %v917_v46 = vmax.f32 %v915_v27, %v916_v3  ;;  %v1479_v59 = vrot.slane %v1478_v10, 2  ;;  %2871 = vpow2.f32 %v1173_v14 }
 0x204   :  { %v1011_v50 = vmax.f32 %v4231_v47, %v4275_v19  ;;  %2873 = vpow2.f32 %v1175_v26  ;;  %v1018_v39 = vmax.f32 %v4229_v52, %v4279_v38  ;;  %v1067_v21 = vmax.f32 %v4238_v13, %v4277_v9 }
 0x205   :  { %v918_v61 = vrot.slane %v917_v46, 1  ;;  %v1480_v27 = vadd.f32 %v1479_v59, %v1478_v10  ;;  %2875 = vpow2.f32 %v1229_v20  ;;  %v4716_v26 = vunpack.c.h.bf16 %v4199_v16 }
 0x206   :  { %v2870_v58 = vpop.eup %2869  ;;  %2877 = vpow2.f32 %v1231_v4  ;;  %v1012_v48 = vrot.slane %v1011_v50, 4  ;;  %v1019_v3 = vrot.slane %v1018_v39, 4  ;;  %v1068_v55 = vrot.slane %v1067_v21, 4 }
 0x207   :  { %v1569_v5 = vmul.f32 %v2870_v58, %v4181_v57  ;;  %v1570_v24 = vmul.f32 %v2870_v58, %v4193_v30  ;;  %v919_v25 = vmax.f32 %v917_v46, %v918_v61  ;;  %v1481_v57 = vrot.slane %v1480_v27, 1 }
 0x208   :  { %v1013_v20 = vmax.f32 %v1011_v50, %v1012_v48  ;;  %v1020_v4 = vmax.f32 %v1018_v39, %v1019_v3  ;;  %v4318_v50 = vpop.xlane.xlu2 %852 }
 0x209   :  { %1634 = vst.msk [vmem:[%s4707_s7 + $0x140] sm:$0xff] %vm1593_vm1, %v1569_v5  ;;  %v1762_v14 = vmul.f32 %v1698_v0, %v1569_v5  ;;  %v1763_v35 = vmul.f32 %v4716_v26, %v1570_v24  ;;  %v1097_v30 = vsub.f32 %v4128_v7, %v919_v25  ;;  %v1098_v10 = vsub.f32 %v4179_v15, %v919_v25  ;;  %v4303_v46 = vpop.eup %2871 }
 0x20a   :  { %1635 = vst.msk [vmem:[%s4707_s7 + $0x148] sm:$0xff] %vm1593_vm1, %v1570_v24  ;;  %v4306_v0 = vadd.f32 %v2036_v23, %v4233_v36  ;;  %v1482_v58 = vadd.f32 %v1481_v57, %v1480_v27  ;;  %v4310_v61 = vpop.eup %2873  ;;  %v4312_v5 = vadd.f32 %v1964_v29, %v1963_v28  ;;  %v4314_v24 = vadd.f32 %v2043_v11, %v2042_v33  ;;  %v4326_v29 = vpop.xlane.xlu0 %855 }
 0x20b   :  { %v1966_v16 = vsel %vm267_vm0, %v1762_v14, 0.0  ;;  %v1967_v59 = vsel %vm267_vm0, %v1763_v35, 0.0  ;;  %v4316_v7 = vadd.f32 %v1843_v17, %v1842_v41  ;;  %v4320_v39 = vpop.eup %2875  ;;  %v1322_v36 = vadd.f32 %v4310_v61, %v4303_v46  ;;  %v4331_v17 = vld [vmem:[%s4701_s1 + $0xa8] sm:$0xff]  }
 0x20c   :  { %v1968_v15 = vadd.f32 %v1967_v59, %v1966_v16  ;;  %2879 = vrcp.f32 %v1482_v58  ;;  %v1177_v23 = vmul.f32 1.442695, %v1097_v30  ;;  %v1179_v35 = vmul.f32 1.442695, %v1098_v10  ;;  %v4324_v27 = vpop.eup %2877 }
 0x20d   :  { %v1014_v28 = vrot.slane %v1013_v20, 2  ;;  %v1021_v33 = vrot.slane %v1020_v4, 2  ;;  %v1069_v41 = vmax.f32 %v1067_v21, %v1068_v55  ;;  %v1323_v11 = vrot.slane %v1322_v36, 4 }
 0x20e   :  { %v1969_v25 = vrot.slane %v1968_v15, 4  ;;  %v1420_v48 = vadd.f32 %v4324_v27, %v4320_v39  ;;  %2881 = vpow2.f32 %v1177_v23  ;;  %v1074_v3 = vmax.f32 %v4318_v50, %v4326_v29 }
 0x20f   :  { %2883 = vpow2.f32 %v1179_v35  ;;  %v1015_v26 = vmax.f32 %v1013_v20, %v1014_v28  ;;  %v1022_v57 = vmax.f32 %v1020_v4, %v1021_v33  ;;  %v1324_v55 = vadd.f32 %v1323_v11, %v1322_v36 }
 0x210   :  { %v1970_v30 = vadd.f32 %v1969_v25, %v1968_v15  ;;  %v1421_v21 = vrot.slane %v1420_v48, 4  ;;  %v1070_v10 = vrot.slane %v1069_v41, 2  ;;  %v1845_v16 = vrot.slane %v4316_v7, 2 }
 0x211   :  { %v1016_v58 = vrot.slane %v1015_v26, 1  ;;  %v1075_v32 = vrot.slane %v1074_v3, 4  ;;  %v1325_v23 = vrot.slane %v1324_v55, 2  ;;  %v1023_v36 = vrot.slane %v1022_v57, 1 }
 0x212   :  { %v2880_v2 = vpop.eup %2879  ;;  %v1422_v51 = vadd.f32 %v1421_v21, %v1420_v48  ;;  %v1971_v25 = vrot.slane %v1970_v30, 2  ;;  %v1071_v11 = vmax.f32 %v1069_v41, %v1070_v10  ;;  %v4717_v48 = vunpack.c.l.bf16 %v4213_v44 }
 0x213   :  { %v1587_v20 = vmul.f32 %v2880_v2, %v4244_v1  ;;  %v1588_v4 = vmul.f32 %v2880_v2, %v4257_v8  ;;  %v1017_v15 = vmax.f32 %v1015_v26, %v1016_v58  ;;  %v1326_v28 = vadd.f32 %v1325_v23, %v1324_v55 }
 0x214   :  { %v4344_v35 = vpop.eup %2881  ;;  %v1423_v33 = vrot.slane %v1422_v51, 2  ;;  %v4718_v2 = vunpack.c.h.bf16 %v4213_v44  ;;  %v1076_v21 = vmax.f32 %v1074_v3, %v1075_v32 }
 0x215   :  { %v4346_v59 = vpop.eup %2883  ;;  %1652 = vst.msk [vmem:[%s4707_s7 + $0x1d0] sm:$0xff] %vm1593_vm1, %v1587_v20  ;;  %v1780_v1 = vmul.f32 %v4717_v48, %v1587_v20  ;;  %v1125_v26 = vsub.f32 %v4231_v47, %v1017_v15  ;;  %v1327_v41 = vrot.slane %v1326_v28, 1  ;;  %v1126_v58 = vsub.f32 %v4275_v19, %v1017_v15  ;;  %v4371_v19 = vld [vmem:[%s4701_s1 + $0x44] sm:$0xf] }
 0x216   :  { %v1781_v8 = vmul.f32 %v4718_v2, %v1588_v4  ;;  %1653 = vst.msk [vmem:[%s4707_s7 + $0x1d8] sm:$0xff] %vm1593_vm1, %v1588_v4  ;;  %v1424_v55 = vadd.f32 %v1423_v33, %v1422_v51  ;;  %v1329_v10 = vadd.f32 %v4346_v59, %v4344_v35  ;;  %v1024_v48 = vmax.f32 %v1022_v57, %v1023_v36 }
 0x217   :  { %v2047_v23 = vsel %vm267_vm0, %v1780_v1, 0.0  ;;  %v1233_v20 = vmul.f32 1.442695, %v1125_v26  ;;  %v1328_v32 = vadd.f32 %v1327_v41, %v1326_v28  ;;  %v1235_v14 = vmul.f32 1.442695, %v1126_v58 }
 0x218   :  { %v2048_v44 = vsel %vm267_vm0, %v1781_v8, 0.0  ;;  %v1425_v3 = vrot.slane %v1424_v55, 1  ;;  %v1330_v2 = vrot.slane %v1329_v10, 4  ;;  %v1127_v4 = vsub.f32 %v4229_v52, %v1024_v48  ;;  %v4378_v52 = vld [vmem:[%s4701_s1 + $0xb0] sm:$0xff]  }
 0x219   :  { %v2049_v47 = vadd.f32 %v2048_v44, %v2047_v23  ;;  %2885 = vpow2.f32 %v1233_v20  ;;  %v1128_v51 = vsub.f32 %v4279_v38, %v1024_v48  ;;  %v1072_v28 = vrot.slane %v1071_v11, 1 }
 0x21a   :  { %2887 = vrcp.f32 %v1328_v32  ;;  %v1426_v37 = vadd.f32 %v1425_v3, %v1424_v55  ;;  %v1331_v15 = vadd.f32 %v1330_v2, %v1329_v10  ;;  %v1237_v57 = vmul.f32 1.442695, %v1127_v4 }
 0x21b   :  { %v2050_v33 = vrot.slane %v2049_v47, 4  ;;  %2889 = vpow2.f32 %v1235_v14  ;;  %v1239_v36 = vmul.f32 1.442695, %v1128_v51  ;;  %v4373_v1 = vadd.f32 %v1971_v25, %v1970_v30  ;;  %v2582_v30 = vld [vmem:[%s4704_s4 + $0x18] sm:$0xff] }
 0x21c   :  { %2891 = vrcp.f32 %v1426_v37  ;;  %v1332_v8 = vrot.slane %v1331_v15, 2  ;;  %v1077_v38 = vrot.slane %v1076_v21, 2  ;;  %v1073_v41 = vmax.f32 %v1071_v11, %v1072_v28  ;;  %2308 = vmatpush.bf16.msrb.mxu1 %v2582_v30 }
 0x21d   :  { %v2051_v26 = vadd.f32 %v2050_v33, %v2049_v47  ;;  %2893 = vpow2.f32 %v1237_v57  ;;  %v1838_v55 = vrot.slane %v4215_v63, 1  ;;  %v1675_v14 = vunpack.c.l.bf16 %v4371_v19 }
 0x21e   :  { %v1333_v10 = vadd.f32 %v1332_v8, %v1331_v15  ;;  %2895 = vpow2.f32 %v1239_v36  ;;  %v4719_v37 = vrot.slane %v4032_v18, 1  ;;  %v1702_v23 = vunpack.c.l.bf16 %v4378_v52 }
 0x21f   :  { %v4390_v58 = vpop.eup %2885  ;;  %v1703_v11 = vunpack.c.h.bf16 %v4378_v52  ;;  %v1141_v44 = vsub.f32 %v4238_v13, %v1073_v41  ;;  %v1142_v20 = vsub.f32 %v4277_v9, %v1073_v41  ;;  %v1973_v47 = vrot.slane %v4373_v1, 1 }
 0x220   :  { %v4388_v25 = vadd.f32 %v4719_v37, %v4032_v18  ;;  %v2888_v48 = vpop.eup %2887  ;;  %v1334_v32 = vrot.slane %v1333_v10, 1  ;;  %v1078_v3 = vmax.f32 %v1076_v21, %v1077_v38  ;;  %v1846_v18 = vadd.f32 %v1845_v16, %v4316_v7 }
 0x221   :  { %v4400_v2 = vpop.eup %2889  ;;  %v2052_v4 = vrot.slane %v2051_v26, 2  ;;  %v1543_v51 = vmul.f32 %v2888_v48, %v4303_v46  ;;  %v1544_v33 = vmul.f32 %v2888_v48, %v4310_v61  ;;  %v4405_v13 = vadd.f32 %v1838_v55, %v4215_v63 }
 0x222   :  { %v2892_v9 = vpop.eup %2891  ;;  %v1335_v15 = vadd.f32 %v1334_v32, %v1333_v10  ;;  %v1427_v57 = vadd.f32 %v4400_v2, %v4390_v58  ;;  %v1265_v21 = vmul.f32 1.442695, %v1141_v44  ;;  %v1267_v36 = vmul.f32 1.442695, %v1142_v20  ;;  %v4441_v20 = vld [vmem:[%s4701_s1 + $0xb8] sm:$0xff]  }
 0x223   :  { %v4409_v28 = vpop.eup %2893  ;;  %1608 = vst.msk [vmem:[%s4707_s7 + $0x70] sm:$0xff] %vm1593_vm1, %v1543_v51  ;;  %v4720_v46 = vunpack.c.h.bf16 %v4165_v6  ;;  %v4721_v63 = vunpack.c.l.bf16 %v4267_v42  ;;  %v1571_v16 = vmul.f32 %v2892_v9, %v4320_v39  ;;  %v1572_v8 = vmul.f32 %v2892_v9, %v4324_v27 }
 0x224   :  { %v4421_v38 = vpop.eup %2895  ;;  %1609 = vst.msk [vmem:[%s4707_s7 + $0x78] sm:$0xff] %vm1593_vm1, %v1544_v33  ;;  %2897 = vrcp.f32 %v1335_v15  ;;  %v1428_v41 = vrot.slane %v1427_v57, 4  ;;  %v1079_v55 = vrot.slane %v1078_v3, 1  ;;  %v1847_v10 = vrot.slane %v1846_v18, 1 }
 0x225   :  { %v1736_v61 = vmul.f32 %v4720_v46, %v1543_v51  ;;  %v1737_v7 = vmul.f32 %v4721_v63, %v1544_v33  ;;  %v4427_v6 = vadd.f32 %v2052_v4, %v2051_v26  ;;  %1636 = vst.msk [vmem:[%s4707_s7 + $0x150] sm:$0xff] %vm1593_vm1, %v1571_v16  ;;  %v4722_v39 = vunpack.c.l.bf16 %v4331_v17 }
 0x226   :  { %v4723_v37 = vunpack.c.h.bf16 %v4331_v17  ;;  %1637 = vst.msk [vmem:[%s4707_s7 + $0x158] sm:$0xff] %vm1593_vm1, %v1572_v8  ;;  %v1429_v48 = vadd.f32 %v1428_v41, %v1427_v57  ;;  %v1434_v32 = vadd.f32 %v4421_v38, %v4409_v28  ;;  %v4453_v17 = vld [vmem:[%s4701_s1 + $0xf0] sm:$0xff]   ;;  %2899 = vpow2.f32 %v1265_v21 }
 0x227   :  { %v1849_v30 = vsel %vm267_vm0, %v1736_v61, 0.0  ;;  %v1764_v27 = vmul.f32 %v4722_v39, %v1571_v16  ;;  %v1850_v26 = vsel %vm267_vm0, %v1737_v7, 0.0  ;;  %2901 = vpow2.f32 %v1267_v36 }
 0x228   :  { %v1765_v44 = vmul.f32 %v4723_v37, %v1572_v8  ;;  %v1080_v33 = vmax.f32 %v1078_v3, %v1079_v55  ;;  %v1430_v15 = vrot.slane %v1429_v48, 2  ;;  %v1704_v46 = vunpack.c.l.bf16 %v4441_v20 }
 0x229   :  { %v1975_v4 = vsel %vm267_vm0, %v1764_v27, 0.0  ;;  %v1435_v57 = vrot.slane %v1434_v32, 4  ;;  %v1705_v61 = vunpack.c.h.bf16 %v4441_v20  ;;  %v1718_v63 = vunpack.c.l.bf16 %v4453_v17 }
 0x22a   :  { %v1976_v51 = vsel %vm267_vm0, %v1765_v44, 0.0  ;;  %v1143_v7 = vsub.f32 %v4318_v50, %v1080_v33  ;;  %v1144_v16 = vsub.f32 %v4326_v29, %v1080_v33  ;;  %v2898_v21 = vpop.eup %2897  ;;  %v1851_v8 = vadd.f32 %v1850_v26, %v1849_v30  ;;  %v2581_v29 = vld [vmem:[%s4704_s4 + $0x10] sm:$0xff] }
 0x22b   :  { %v1977_v9 = vadd.f32 %v1976_v51, %v1975_v4  ;;  %v1431_v41 = vadd.f32 %v1430_v15, %v1429_v48  ;;  %v1436_v39 = vadd.f32 %v1435_v57, %v1434_v32  ;;  %v1719_v36 = vunpack.c.h.bf16 %v4453_v17  ;;  %2309 = vmatpush.bf16.msrb.mxu1 %v2581_v29 }
 0x22c   :  { %v1545_v3 = vmul.f32 %v2898_v21, %v4344_v35  ;;  %v1546_v55 = vmul.f32 %v2898_v21, %v4346_v59  ;;  %v1269_v27 = vmul.f32 1.442695, %v1143_v7  ;;  %v4465_v37 = vadd.f32 %v1847_v10, %v1846_v18  ;;  %v4467_v44 = vpop.eup %2899 }
 0x22d   :  { %v1978_v4 = vrot.slane %v1977_v9, 4  ;;  %v1432_v51 = vrot.slane %v1431_v41, 1  ;;  %v1437_v50 = vrot.slane %v1436_v39, 2  ;;  %v4724_v30 = vrot.slane %v3994_v43, 1  ;;  %v4477_v35 = vpop.eup %2901 }
 0x22e   :  { %1610 = vst.msk [vmem:[%s4707_s7 + $0x80] sm:$0xff] %vm1593_vm1, %v1545_v3  ;;  %v4725_v59 = vunpack.c.h.bf16 %v4267_v42  ;;  %v1739_v10 = vmul.f32 %v1675_v14, %v1546_v55  ;;  %v1271_v48 = vmul.f32 1.442695, %v1144_v16  ;;  %v4726_v32 = vrot.slane %v3539_v34, 2 }
 0x22f   :  { %v4475_v26 = vadd.f32 %v4724_v30, %v3994_v43  ;;  %v1852_v43 = vrot.slane %v1851_v8, 4  ;;  %1611 = vst.msk [vmem:[%s4707_s7 + $0x88] sm:$0xff] %vm1593_vm1, %v1546_v55  ;;  %v1433_v15 = vadd.f32 %v1432_v51, %v1431_v41  ;;  %v1438_v57 = vadd.f32 %v1437_v50, %v1436_v39  ;;  %v2580_v41 = vld [vmem:[%s4704_s4 + $0x8] sm:$0xff] }
 0x230   :  { %v1738_v18 = vmul.f32 %v4725_v59, %v1545_v3  ;;  %v1918_v33 = vadd.f32 %v4726_v32, %v3539_v34  ;;  %v1483_v42 = vadd.f32 %v4477_v35, %v4467_v44  ;;  %v1859_v14 = vsel %vm267_vm0, %v1739_v10, 0.0  ;;  %2310 = vmatpush.bf16.msrb.mxu1 %v2580_v41  ;;  %v2579_v32 = vld [vmem:[%s4704_s4] sm:$0xff] }
 0x231   :  { %2903 = vpow2.f32 %v1269_v27  ;;  %v1910_v7 = vrot.slane %v4154_v60, 1  ;;  %v4499_v34 = vadd.f32 %v1978_v4, %v1977_v9  ;;  %v1439_v21 = vrot.slane %v1438_v57, 1  ;;  %v4510_v9 = vld [vmem:[%s4701_s1 + $0xf8] sm:$0xff]  }
 0x232   :  { %v1858_v19 = vsel %vm267_vm0, %v1738_v18, 0.0  ;;  %2905 = vrcp.f32 %v1433_v15  ;;  %v1484_v39 = vrot.slane %v1483_v42, 4  ;;  %v1919_v3 = vrot.slane %v1918_v33, 1 }
 0x233   :  { %v1860_v16 = vadd.f32 %v1859_v14, %v1858_v19  ;;  %2907 = vpow2.f32 %v1271_v48  ;;  %v1926_v55 = vrot.slane %v3697_v49, 2  ;;  %v4505_v51 = vadd.f32 %v1852_v43, %v1851_v8 }
 0x234   :  { %v1440_v27 = vadd.f32 %v1439_v21, %v1438_v57  ;;  %v1485_v4 = vadd.f32 %v1484_v39, %v1483_v42  ;;  %v4512_v29 = vadd.f32 %v1919_v3, %v1918_v33  ;;  %v4727_v59 = vunpack.c.l.b16 %v3543_v40  ;;  %2311 = vmatpush.bf16.msrb.mxu1 %v2579_v32 }
 0x235   :  { %v1861_v50 = vrot.slane %v1860_v16, 4  ;;  %v1927_v30 = vadd.f32 %v1926_v55, %v3697_v49  ;;  %v4728_v18 = vunpack.c.l.b16 %v3700_v53  ;;  %v1980_v10 = vrot.slane %v4499_v34, 2 }
 0x236   :  { %2909 = vrcp.f32 %v1440_v27  ;;  %v1911_v33 = vadd.f32 %v1910_v7, %v4154_v60  ;;  %v1486_v49 = vrot.slane %v1485_v4, 2  ;;  %v1720_v40 = vunpack.c.l.bf16 %v4510_v9 }
 0x237   :  { %v4520_v8 = vsel %vm2206_vm2, %v4728_v18, %v4727_v59  ;;  %v1862_v48 = vadd.f32 %v1861_v50, %v1860_v16  ;;  %v4527_v43 = vpop.eup %2903  ;;  %v1721_v53 = vunpack.c.h.bf16 %v4510_v9  ;;  %v1928_v15 = vrot.slane %v1927_v30, 1 }
 0x238   :  { %v2906_v57 = vpop.eup %2905  ;;  %v2078_v19 = vpack.c.bf16 %v4388_v25, %v4388_v25  ;;  %v2079_v14 = vpack.c.bf16 %v4405_v13, %v4405_v13  ;;  %v2088_v60 = vpack.c.bf16 %v4512_v29, %v4512_v29  ;;  %v1487_v41 = vadd.f32 %v1486_v49, %v1485_v4 }
 0x239   :  { %v1863_v42 = vrot.slane %v1862_v48, 2  ;;  %v4537_v7 = vpop.eup %2907  ;;  %v1573_v16 = vmul.f32 %v2906_v57, %v4390_v58  ;;  %v1574_v21 = vmul.f32 %v2906_v57, %v4400_v2  ;;  %v1929_v39 = vadd.f32 %v1928_v15, %v1927_v30 }
 0x23a   :  { %v1490_v55 = vadd.f32 %v4537_v7, %v4527_v43  ;;  %v2080_v25 = vpack.c.bf16 %v4465_v37, %v4465_v37  ;;  %v2086_v13 = vpack.c.bf16 %v4475_v26, %v4475_v26  ;;  %v1488_v50 = vrot.slane %v1487_v41, 1 }
 0x23b   :  { %v1864_v3 = vadd.f32 %v1863_v42, %v1862_v48  ;;  %1638 = vst.msk [vmem:[%s4707_s7 + $0x160] sm:$0xff] %vm1593_vm1, %v1573_v16  ;;  %v1766_v58 = vmul.f32 %v1702_v23, %v1573_v16  ;;  %v1767_v2 = vmul.f32 %v1703_v11, %v1574_v21  ;;  %v2087_v27 = vpack.c.bf16 %v1911_v33, %v1911_v33 }
 0x23c   :  { %v2910_v4 = vpop.eup %2909  ;;  %1639 = vst.msk [vmem:[%s4707_s7 + $0x168] sm:$0xff] %vm1593_vm1, %v1574_v21  ;;  %v1491_v37 = vrot.slane %v1490_v55, 4  ;;  %v2089_v26 = vpack.c.bf16 %v1929_v39, %v1929_v39  ;;  %v4729_v30 = vpack.c.bf16 %v3953_v31, %v3953_v31  ;;  %v1489_v33 = vadd.f32 %v1488_v50, %v1487_v41 }
 0x23d   :  { %v1865_v29 = vrot.slane %v1864_v3, 1  ;;  %v1984_v23 = vsel %vm267_vm0, %v1766_v58, 0.0  ;;  %v1985_v52 = vsel %vm267_vm0, %v1767_v2, 0.0  ;;  %v1575_v11 = vmul.f32 %v2910_v4, %v4409_v28 }
 0x23e   :  { %v4562_v59 = vperm.slane %v4729_v30, 0  ;;  %v1576_v18 = vmul.f32 %v2910_v4, %v4421_v38  ;;  %v1986_v32 = vadd.f32 %v1985_v52, %v1984_v23  ;;  %v1492_v49 = vadd.f32 %v1491_v37, %v1490_v55 }
 0x23f   :  { %v1866_v48 = vadd.f32 %v1865_v29, %v1864_v3  ;;  %1640 = vst.msk [vmem:[%s4707_s7 + $0x170] sm:$0xff] %vm1593_vm1, %v1575_v11  ;;  %v1768_v31 = vmul.f32 %v1704_v46, %v1575_v11  ;;  %v2146_v57 = vperm.slane %v2078_v19, 0  ;;  %v2147_v42 = vperm.slane %v2079_v14, 0 }
 0x240   :  { %v1769_v15 = vmul.f32 %v1705_v61, %v1576_v18  ;;  %v1987_v16 = vrot.slane %v1986_v32, 4  ;;  %1641 = vst.msk [vmem:[%s4707_s7 + $0x178] sm:$0xff] %vm1593_vm1, %v1576_v18  ;;  %2911 = vrcp.f32 %v1489_v33  ;;  %v1493_v38 = vrot.slane %v1492_v49, 2 }
 0x241   :  { %v2082_v28 = vpack.c.bf16 %v1866_v48, %v1866_v48  ;;  %v1993_v21 = vsel %vm267_vm0, %v1768_v31, 0.0  ;;  %v2148_v39 = vperm.slane %v2080_v25, 0  ;;  %v4730_v20 = vpack.c.bf16 %v3868_v22, %v3868_v22 }
 0x242   :  { %v1994_v41 = vsel %vm267_vm0, %v1769_v15, 0.0  ;;  %v4585_v19 = vadd.f32 %v1987_v16, %v1986_v32  ;;  %v1494_v3 = vadd.f32 %v1493_v38, %v1492_v49  ;;  %v4588_v55 = vadd.f32 %v1980_v10, %v4499_v34 }
 0x243   :  { %v2153_v46 = vperm.slane %v4730_v20, 0  ;;  %v2150_v61 = vperm.slane %v2082_v28, 0  ;;  %v1995_v14 = vadd.f32 %v1994_v41, %v1993_v21  ;;  %v2154_v58 = vperm.slane %v2086_v13, 0 }
 0x244   :  { %v2155_v2 = vperm.slane %v2087_v27, 0  ;;  %v2156_v50 = vperm.slane %v2088_v60, 0  ;;  %v1495_v29 = vrot.slane %v1494_v3, 1  ;;  %v2157_v37 = vperm.slane %v2089_v26, 0 }
 0x245   :  { %v1996_v4 = vrot.slane %v1995_v14, 4  ;;  %v2177_v25 = vunpack.c.l.b16 %v4562_v59  ;;  %v2182_v30 = vunpack.c.l.b16 %v2150_v61  ;;  %v1989_v22 = vrot.slane %v4585_v19, 2 }
 0x246   :  { %v2178_v23 = vunpack.c.l.b16 %v2146_v57  ;;  %v2179_v52 = vunpack.c.l.b16 %v2147_v42  ;;  %v2912_v11 = vpop.eup %2911  ;;  %v1496_v48 = vadd.f32 %v1495_v29, %v1494_v3  ;;  %v2180_v32 = vunpack.c.l.b16 %v2148_v39 }
 0x247   :  { %v1997_v18 = vadd.f32 %v1996_v4, %v1995_v14  ;;  %v2185_v33 = vunpack.c.l.b16 %v2153_v46  ;;  %v1589_v34 = vmul.f32 %v2912_v11, %v4467_v44  ;;  %v1590_v10 = vmul.f32 %v2912_v11, %v4477_v35 }
 0x248   :  { %v2186_v60 = vunpack.c.l.b16 %v2154_v58  ;;  %v2187_v13 = vunpack.c.l.b16 %v2155_v2  ;;  %2913 = vrcp.f32 %v1496_v48  ;;  %v2188_v27 = vunpack.c.l.b16 %v2156_v50 }
 0x249   :  { %1654 = vst.msk [vmem:[%s4707_s7 + $0x1e0] sm:$0xff] %vm1593_vm1, %v1589_v34  ;;  %v1782_v26 = vmul.f32 %v1718_v63, %v1589_v34  ;;  %v1783_v59 = vmul.f32 %v1719_v36, %v1590_v10  ;;  %v1854_v44 = vrot.slane %v4505_v51, 2  ;;  %v4731_v35 = vunpack.c.l.b16 %v3748_v62 }
 0x24a   :  { %1655 = vst.msk [vmem:[%s4707_s7 + $0x1e8] sm:$0xff] %vm1593_vm1, %v1590_v10  ;;  %v4732_v63 = vunpack.c.l.b16 %v3506_v56  ;;  %v4733_v57 = vunpack.c.l.b16 %v3599_v54  ;;  %v2189_v56 = vunpack.c.l.b16 %v2157_v37  ;;  %v1974_v3 = vadd.f32 %v1973_v47, %v4373_v1 }
 0x24b   :  { %v2209_v49 = vsel %vm2208_vm3, %v4731_v35, %v4520_v8  ;;  %v2056_v36 = vsel %vm267_vm0, %v1782_v26, 0.0  ;;  %v2057_v31 = vsel %vm267_vm0, %v1783_v59, 0.0  ;;  %v1855_v16 = vadd.f32 %v1854_v44, %v4505_v51 }
 0x24c   :  { %v2220_v17 = vsel %vm2206_vm2, %v4732_v63, %v2182_v30  ;;  %v2211_v15 = vsel %vm2210_vm4, %v2177_v25, %v2209_v49  ;;  %v2058_v28 = vadd.f32 %v2057_v31, %v2056_v36  ;;  %v1990_v4 = vadd.f32 %v1989_v22, %v4585_v19  ;;  %v2254_v49 = vpop.permute.xlu1 %2253 }
 0x24d   :  { %v2221_v42 = vsel %vm2208_vm3, %v4733_v57, %v2220_v17  ;;  %v2213_v62 = vsel %vm2212_vm5, %v2178_v23, %v2211_v15  ;;  %v1856_v20 = vrot.slane %v1855_v16, 1  ;;  %v1982_v29 = vrot.slane %v4588_v55, 1 }
 0x24e   :  { %v2222_v8 = vsel %vm2210_vm4, %v2185_v33, %v2221_v42  ;;  %v2215_v38 = vsel %vm2214_vm6, %v2179_v52, %v2213_v62  ;;  %v2914_v41 = vpop.eup %2913  ;;  %v2059_v39 = vrot.slane %v2058_v28, 4  ;;  %v1998_v1 = vrot.slane %v1997_v18, 2 }
 0x24f   :  { %v2223_v21 = vsel %vm2212_vm5, %v2186_v60, %v2222_v8  ;;  %v2217_v54 = vsel %vm2216_vm7, %v2180_v32, %v2215_v38  ;;  %v1591_v61 = vmul.f32 %v2914_v41, %v4527_v43  ;;  %v1592_v51 = vmul.f32 %v2914_v41, %v4537_v7  ;;  %v4736_v41 = vld [vmem:[#allocation5_spill] sm:$0xff] }
 0x250   :  { %v2224_v46 = vsel %vm2214_vm6, %v2187_v13, %v2223_v21  ;;  %v2060_v58 = vadd.f32 %v2059_v39, %v2058_v28  ;;  %v1857_v2 = vadd.f32 %v1856_v20, %v1855_v16  ;;  %v1991_v37 = vrot.slane %v1990_v4, 1 }
 0x251   :  { %v2225_v14 = vsel %vm2216_vm7, %v2188_v27, %v2224_v46  ;;  %1656 = vst.msk [vmem:[%s4707_s7 + $0x1f0] sm:$0xff] %vm1593_vm1, %v1591_v61  ;;  %v1784_v43 = vmul.f32 %v1720_v40, %v1591_v61  ;;  %v1785_v7 = vmul.f32 %v1721_v53, %v1592_v51  ;;  %v4734_v25 = vrot.slane %v4314_v24, 1 }
 0x252   :  { %v2226_v50 = vsel %vm2218_vm8, %v2189_v56, %v2225_v14  ;;  %v2061_v47 = vrot.slane %v2060_v58, 2  ;;  %1657 = vst.msk [vmem:[%s4707_s7 + $0x1f8] sm:$0xff] %vm1593_vm1, %v1592_v51  ;;  %v2081_v19 = vpack.c.bf16 %v1857_v2, %v1857_v2  ;;  %v1999_v53 = vadd.f32 %v1998_v1, %v1997_v18  ;;  %v4739_v2 = vld [vmem:[#allocation6_spill] sm:$0xff] }
 0x253   :  { %v2046_v30 = vadd.f32 %v4734_v25, %v4314_v24  ;;  %v2065_v40 = vsel %vm267_vm0, %v1784_v43, 0.0  ;;  %v2066_v9 = vsel %vm267_vm0, %v1785_v7, 0.0  ;;  %v2054_v22 = vrot.slane %v4427_v6, 1 }
 0x254   :  { %v2093_v23 = vpack.c.bf16 %v4312_v5, %v4312_v5  ;;  %v2067_v52 = vadd.f32 %v2066_v9, %v2065_v40  ;;  %v2149_v11 = vperm.slane %v2081_v19, 0  ;;  %v2062_v48 = vadd.f32 %v2061_v47, %v2060_v58 }
 0x255   :  { %v2101_v32 = vpack.c.bf16 %v4306_v0, %v4306_v0  ;;  %v1983_v33 = vadd.f32 %v1982_v29, %v4588_v55  ;;  %v2000_v34 = vrot.slane %v1999_v53, 1  ;;  %v2094_v24 = vpack.c.bf16 %v1974_v3, %v1974_v3  ;;  %v4737_v3 = vld [vmem:[#allocation7_spill] sm:$0xff]  ;;  %v4741_v29 = vld [vmem:[#allocation8_spill] sm:$0xff] }
 0x256   :  { %v2068_v10 = vrot.slane %v2067_v52, 4  ;;  %v2181_v60 = vunpack.c.l.b16 %v2149_v11  ;;  %v2055_v13 = vadd.f32 %v2054_v22, %v4427_v6  ;;  %v2063_v18 = vrot.slane %v2062_v48, 1 }
 0x257   :  { %v4735_v27 = vpack.c.bf16 %v4188_v12, %v4188_v12  ;;  %v1992_v5 = vadd.f32 %v1991_v37, %v1990_v4  ;;  %v2001_v59 = vadd.f32 %v2000_v34, %v1999_v53  ;;  %v2102_v44 = vpack.c.bf16 %v2046_v30, %v2046_v30 }
 0x258   :  { %v2069_v35 = vadd.f32 %v2068_v10, %v2067_v52  ;;  %v2219_v0 = vsel %vm2218_vm8, %v2181_v60, %v2217_v54  ;;  %v2064_v63 = vadd.f32 %v2063_v18, %v2062_v48  ;;  %v2161_v55 = vperm.slane %v2093_v23, 0  ;;  %v2256_v18 = vpop.permute.xlu2 %2255 }
 0x259   :  { %v2160_v26 = vperm.slane %v4735_v27, 0  ;;  %v2241_v17 = vpack.c.b16 %v2226_v50, %v2219_v0  ;;  %v2095_v36 = vpack.c.bf16 %v1983_v33, %v1983_v33  ;;  %v2162_v31 = vperm.slane %v2094_v24, 0 }
 0x25a   :  { %v2070_v15 = vrot.slane %v2069_v35, 2  ;;  %v2103_v6 = vpack.c.bf16 %v2055_v13, %v2055_v13  ;;  %v2169_v57 = vperm.slane %v2101_v32, 0  ;;  %v2170_v42 = vperm.slane %v2102_v44, 0  ;;  %v2594_v44 = vld [vmem:[%s4705_s5] ss:$0 sm:$0xff]  ;;  %s2943_s5 = smov 128  }
 0x25b   :  { %v2192_v28 = vunpack.c.l.b16 %v2160_v26  ;;  %v2259_v12 = vsel %vm267_vm0, %v2241_v17, %v2254_v49  ;;  %v2096_v16 = vpack.c.bf16 %v1992_v5, %v1992_v5  ;;  %v2104_v62 = vpack.c.bf16 %v2064_v63, %v2064_v63 }
 0x25c   :  { %v2200_v8 = vunpack.c.l.b16 %v4138_v45  ;;  %2541 = vmatmul.msk.bf16.vlgmr.msrb.gmra.mxu1 %vm2299_vm9, %v2259_v12  ;;  %v2071_v56 = vadd.f32 %v2070_v15, %v2069_v35  ;;  %v2097_v38 = vpack.c.bf16 %v2001_v59, %v2001_v59  ;;  %v2193_v21 = vunpack.c.l.b16 %v2161_v55 }
 0x25d   :  { %v2198_v39 = vunpack.c.l.b16 %v4736_v41  ;;  %v2163_v20 = vperm.slane %v2095_v36, 0  ;;  %v2194_v54 = vunpack.c.l.b16 %v2162_v31  ;;  %v2201_v46 = vunpack.c.l.b16 %v2169_v57 }
 0x25e   :  { %v2072_v61 = vrot.slane %v2071_v56, 1  ;;  %v2171_v51 = vperm.slane %v2103_v6, 0  ;;  %v2202_v14 = vunpack.c.l.b16 %v2170_v42  ;;  %v4738_v58 = vunpack.c.l.b16 %v4737_v3 }
 0x25f   :  { %v4740_v50 = vunpack.c.l.b16 %v4739_v2  ;;  %v2164_v45 = vperm.slane %v2096_v16, 0  ;;  %v2172_v43 = vperm.slane %v2104_v62, 0  ;;  %v4742_v1 = vunpack.c.l.b16 %v4741_v29 }
 0x260   :  { %v2073_v19 = vadd.f32 %v2072_v61, %v2071_v56  ;;  %v2165_v37 = vperm.slane %v2097_v38, 0  ;;  %v2195_v22 = vunpack.c.l.b16 %v2163_v20  ;;  %v2203_v23 = vunpack.c.l.b16 %v2171_v51 }
 0x261   :  { %v2227_v4 = vsel %vm2206_vm2, %v4740_v50, %v4738_v58  ;;  %v2234_v47 = vsel %vm2206_vm2, %v4742_v1, %v2198_v39  ;;  %v2196_v11 = vunpack.c.l.b16 %v2164_v45  ;;  %v2204_v48 = vunpack.c.l.b16 %v2172_v43 }
 0x262   :  { %v2228_v7 = vsel %vm2208_vm3, %v2192_v28, %v2227_v4  ;;  %v2235_v30 = vsel %vm2208_vm3, %v2200_v8, %v2234_v47  ;;  %v2105_v53 = vpack.c.bf16 %v2073_v19, %v2073_v19  ;;  %v2197_v33 = vunpack.c.l.b16 %v2165_v37 }
 0x263   :  { %v2229_v25 = vsel %vm2210_vm4, %v2193_v21, %v2228_v7  ;;  %v2236_v9 = vsel %vm2210_vm4, %v2201_v46, %v2235_v30 }
 0x264   :  { %v2230_v40 = vsel %vm2212_vm5, %v2194_v54, %v2229_v25  ;;  %v2237_v52 = vsel %vm2212_vm5, %v2202_v14, %v2236_v9  ;;  %v2173_v32 = vperm.slane %v2105_v53, 0 }
 0x265   :  { %v2231_v24 = vsel %vm2214_vm6, %v2195_v22, %v2230_v40  ;;  %v2238_v10 = vsel %vm2214_vm6, %v2203_v23, %v2237_v52 }
 0x266   :  { %v2205_v34 = vunpack.c.l.b16 %v2173_v32  ;;  %v2232_v60 = vsel %vm2216_vm7, %v2196_v11, %v2231_v24  ;;  %v2239_v13 = vsel %vm2216_vm7, %v2204_v48, %v2238_v10 }
 0x267   :  { %v2233_v27 = vsel %vm2218_vm8, %v2197_v33, %v2232_v60 }
 0x268   :  { %v2240_v26 = vsel %vm2218_vm8, %v2205_v34, %v2239_v13 }
 0x269   :  { %v2242_v5 = vpack.c.b16 %v2240_v26, %v2233_v27 }
 0x26b   :  { %v2262_v59 = vsel %vm267_vm0, %v2242_v5, %v2256_v18 }
 0x26c   :  { %2542 = vmatmul.msk.bf16.gmra.mxu1 %vm2299_vm9, %v2262_v59 }
 0x2d9   :  { %v2313_v35 = vpop.f32.mrf.mxu1 }
 0x2da   :  { %v2314_v49 = vadd.f32 %v2594_v44, %v2313_v35 }
 0x2dc   :  { %2323 = vst.msk [vmem:[#allocation2] sm:$0xff] %vm267_vm0, %v2314_v49 }
 0x2e1   :  { %v2315_v0 = vpop.f32.mrf.mxu1 }
 0x2e2   :  { %v2316_v63 = vadd.f32 %v2594_v44, %v2315_v0 }
 0x2e4   :  { %2324 = vst.msk [vmem:[#allocation2 + $0x8] sm:$0xff] %vm267_vm0, %v2316_v63 }
 0x2e9   :  { %v2318_v55 = vpop.f32.mrf.mxu1 }
 0x2ea   :  { %v2319_v17 = vadd.f32 %v2594_v44, %v2318_v55 }
 0x2ec   :  { %2325 = vst.msk [vmem:[#allocation2 + $0x10] sm:$0xff] %vm267_vm0, %v2319_v17 }
 0x2f1   :  { %v2320_v36 = vpop.f32.mrf.mxu1 }
 0x2f2   :  { %v2321_v31 = vadd.f32 %v2594_v44, %v2320_v36 }
 0x2f4   :  { %2326 = vst.msk [vmem:[#allocation2 + $0x18] sm:$0xff] %vm267_vm0, %v2321_v31 }
 0x2f5   :  { %2339 = dma.vmem_to_hbm [thread:$0]  %s2332_s30, 512, %s2334_s27, [#allocation3], %s2943_s5, %s2943_s5, %s2944_s28  }
 0x2f6   :  { %2939 = dma.done.wait [#allocation3], 512  }
 0x2f7   :  { %2940 = vsyncadd [#allocation3], 4294966784 }
 0x2f8   :  { %2348 = vsyncpa [#allocation3], 1 }

</bundles_post_ra>
